<compile_context>
chip_gen: v7x
topology: tpu7x:2x2x1
jax: 0.10.0
libtpu: 0.0.40
codegen_flags: <defaults>
</compile_context>

<pallas_src>
import functools

import jax
import jax.numpy as jnp
from jax import lax
from jax.experimental import pallas as pl
from jax.experimental.pallas import tpu as pltpu


def _pitch_decoder_kernel(x_ref,
                          w1_ref, b1_ref, w2_ref, b2_ref,
                          w7_ref, b7_ref, w8_ref, b8_ref,
                          w9t_ref, b9_ref,
                          o_ref, pad_ref, col_ref, *, ns):
    """One batch element per grid step; all layers fused, intermediates stay in VMEM.

    x_ref  : (1, c_in, L)      input block (PyTorch NCL; lane dim = L)
    wX_ref : (K*BW, Cout)      im2col-fused conv weights (BW = Cin rounded up to 128,
                               zero rows for the padded channels)
    bX_ref : (1, Cout)
    w9t_ref: (n_class, c_h//4) conv9 weight, pre-transposed
    b9_ref : (n_class, 1)
    o_ref  : (1, n_class, L)   output block (lane-dense in L)
    pad_ref: (L + 4, BW_max)   shared VMEM scratch: reflect-padded activation
    col_ref: (L, KC_max)       shared VMEM scratch: im2col LHS
    """
    L = x_ref.shape[2]

    # Zero the shared pad scratch once per grid step so the (Cin -> 128-lane) padding
    # lanes read by the band copies are 0, not uninitialized VMEM (they hit zero weight
    # rows, so only NaN/Inf garbage would matter).
    pad_ref[...] = jnp.zeros(pad_ref.shape, jnp.float32)

    def conv_layer(h, w_ref, b_ref):
        """reflect-pad + conv(K) + bias + leaky_relu as a single im2col MXU matmul."""
        cin = h.shape[1]
        bw = ((cin + 127) // 128) * 128          # 128-aligned im2col band width
        ksize = w_ref.shape[0] // bw
        p = ksize // 2
        # ---- in-kernel reflect padding along L (sublane axis), staged in VMEM scratch ----
        pad_ref[p:p + L, :cin] = h
        for i in range(p):                       # tiny static unroll (p <= 2)
            pad_ref[p - 1 - i:p - i, :cin] = h[1 + i:2 + i, :]                    # left:  x[p] .. x[1]
            pad_ref[p + L + i:p + L + i + 1, :cin] = h[L - 2 - i:L - 1 - i, :]    # right: x[L-2] ..
        # ---- im2col: K shifted windows -> 128-aligned lane bands of the shared scratch ----
        for k in range(ksize):
            col_ref[:, k * bw:(k + 1) * bw] = pad_ref[k:k + L, :bw]
        # ---- one fused MXU matmul over the K*BW contraction, f32 accumulation ----
        acc = jnp.dot(col_ref[:, :ksize * bw], w_ref[...],
                      preferred_element_type=jnp.float32)
        acc = acc + b_ref[...].astype(jnp.float32)
        return jnp.where(acc >= 0, acc, ns * acc)                 # leaky_relu(ns)

    # NCL input block -> channels-last compute layout (single in-kernel transpose; XLU).
    h = jnp.transpose(x_ref[0].astype(jnp.float32))               # (L, c_in)
    # conv_block 1: conv1, conv2 (+leaky_relu), drop1 (eval -> identity)
    h = conv_layer(h, w1_ref, b1_ref)
    h = conv_layer(h, w2_ref, b2_ref)
    # conv_block 2: conv7, conv8 (+leaky_relu), drop4 (eval -> identity)
    h = conv_layer(h, w7_ref, b7_ref)
    h = conv_layer(h, w8_ref, b8_ref)
    # conv9: kernel_size=1, no padding, no activation.  Contract over channels with the
    # weight as LHS so the result is (n_class, L) -> lane-dense NCL output directly.
    out = lax.dot_general(w9t_ref[...], h,
                          dimension_numbers=(((1,), (1,)), ((), ())),
                          preferred_element_type=jnp.float32)
    out = out + b9_ref[...].astype(jnp.float32)                   # (n_class, 1) broadcast
    o_ref[0] = out.astype(o_ref.dtype)


def _round_up(x, m):
    return ((x + m - 1) // m) * m


def _fuse_conv_params(w, b):
    """(K, Cin, Cout) conv taps -> im2col-fused (K*BW, Cout), BW = Cin rounded to 128."""
    k, cin, cout = w.shape
    bw = _round_up(cin, 128)
    wp = jnp.pad(w, ((0, 0), (0, bw - cin), (0, 0)))    # zero rows for padding lanes
    return wp.reshape(k * bw, cout), b.reshape(1, cout)


def pitch_decoder_forward(x_ncl, params, ns=0.01):
    """x_ncl: (N, c_in, L) PyTorch NCL layout.  Returns (N, n_class, L)."""
    N, c_in, L = x_ncl.shape
    c_h = params["conv1"][0].shape[-1]
    n_class = params["conv9"][0].shape[-1]

    w1f, b1f = _fuse_conv_params(*params["conv1"])
    w2f, b2f = _fuse_conv_params(*params["conv2"])
    w7f, b7f = _fuse_conv_params(*params["conv7"])
    w8f, b8f = _fuse_conv_params(*params["conv8"])
    w9, b9 = params["conv9"]
    w9t = jnp.transpose(w9[0])                          # (n_class, c_h//4)
    b9c = b9.reshape(n_class, 1)

    def full_spec(shape):
        zeros = (0,) * len(shape)
        return pl.BlockSpec(shape, lambda n, _z=zeros: _z)

    # Shared scratch sizing (reused by every layer).
    bw_max = max(_round_up(c_in, 128), _round_up(c_h, 128))
    col_w = max(5 * _round_up(c_in, 128), 5 * _round_up(c_h, 128),
                3 * _round_up(c_h, 128), 3 * _round_up(c_h // 2, 128))

    flops = 2 * N * L * (5 * c_in * c_h + 5 * c_h * c_h + 3 * c_h * (c_h // 2)
                         + 3 * (c_h // 2) * (c_h // 4) + (c_h // 4) * n_class)
    bytes_accessed = 4 * (x_ncl.size + N * L * n_class
                          + sum(a.size for a in (w1f, b1f, w2f, b2f, w7f, b7f,
                                                 w8f, b8f, w9t, b9c)))

    kern = functools.partial(_pitch_decoder_kernel, ns=ns)
    return pl.pallas_call(
        kern,
        out_shape=jax.ShapeDtypeStruct((N, n_class, L), x_ncl.dtype),
        grid=(N,),
        in_specs=[
            pl.BlockSpec((1, c_in, L), lambda n: (n, 0, 0)),
            full_spec(w1f.shape), full_spec(b1f.shape),
            full_spec(w2f.shape), full_spec(b2f.shape),
            full_spec(w7f.shape), full_spec(b7f.shape),
            full_spec(w8f.shape), full_spec(b8f.shape),
            full_spec(w9t.shape), full_spec(b9c.shape),
        ],
        out_specs=pl.BlockSpec((1, n_class, L), lambda n: (n, 0, 0)),
        scratch_shapes=[
            pltpu.VMEM((L + 4, bw_max), jnp.float32),   # shared reflect-pad scratch
            pltpu.VMEM((L, col_w), jnp.float32),        # shared im2col scratch
        ],
        compiler_params=pltpu.CompilerParams(
            dimension_semantics=("parallel",),
            vmem_limit_bytes=64 * 1024 * 1024),
        cost_estimate=pl.CostEstimate(flops=int(flops), transcendentals=0,
                                      bytes_accessed=int(bytes_accessed)),
    )(x_ncl, w1f, b1f, w2f, b2f, w7f, b7f, w8f, b8f, w9t, b9c)


# --------------------------- parameter init (PyTorch-style) ---------------------------

def init_conv_params(key, c_in, c_out, k):
    """Deterministic PyTorch-style Conv1d init; weights stored as (K, Cin, Cout)."""
    kw, kb = jax.random.split(key)
    fan_in = c_in * k
    bound = 1.0 / (fan_in ** 0.5)
    w = jax.random.uniform(kw, (k, c_in, c_out), jnp.float32, -bound, bound)
    b = jax.random.uniform(kb, (c_out,), jnp.float32, -bound, bound)
    return w, b


def init_pitch_decoder_params(key, c_in, c_h, n_class):
    keys = jax.random.split(key, 5)
    return {
        "conv1": init_conv_params(keys[0], c_in, c_h, 5),
        "conv2": init_conv_params(keys[1], c_h, c_h, 5),
        "conv7": init_conv_params(keys[2], c_h, c_h // 2, 3),
        "conv8": init_conv_params(keys[3], c_h // 2, c_h // 4, 3),
        "conv9": init_conv_params(keys[4], c_h // 4, n_class, 1),
    }
    # conv3..conv6, ins_norm1..4, drop2/drop3 exist in __init__ but are unused in forward.


# --------------------------- pure-JAX reference for validation ---------------------------

def _reference_forward(x_ncl, params, ns=0.01):
    h = jnp.transpose(x_ncl, (0, 2, 1))                    # NLC

    def conv(h, w, b, act):
        K = w.shape[0]
        p = K // 2
        if p > 0:
            h = jnp.pad(h, ((0, 0), (p, p), (0, 0)), mode="reflect")
        L = h.shape[1] - (K - 1)
        acc = sum(jnp.einsum("nlc,cd->nld", h[:, k:k + L, :], w[k]) for k in range(K)) + b
        if act:
            acc = jnp.where(acc >= 0, acc, ns * acc)
        return acc

    h = conv(h, *params["conv1"], True)
    h = conv(h, *params["conv2"], True)
    h = conv(h, *params["conv7"], True)
    h = conv(h, *params["conv8"], True)
    h = conv(h, *params["conv9"], False)
    return jnp.transpose(h, (0, 2, 1))


if __name__ == "__main__":
    # Small shapes consistent with the module (scaled-down c_in/c_h).
    N, C_IN, C_H, N_CLASS, L = 2, 16, 32, 1, 16

    key = jax.random.PRNGKey(0)
    k_x, k_p = jax.random.split(key)
    x = jax.random.normal(k_x, (N, C_IN, L), jnp.float32)   # PyTorch NCL input
    params = init_pitch_decoder_params(k_p, C_IN, C_H, N_CLASS)

    out = pitch_decoder_forward(x, params)
    out = jax.block_until_ready(out)
    assert out.shape == (N, N_CLASS, L), out.shape

    ref = _reference_forward(x, params)
    max_err = float(jnp.max(jnp.abs(out - ref)))
    assert jnp.allclose(out, ref, rtol=1e-4, atol=1e-4), max_err
    print("KERNEL_OK")
</pallas_src>

<mosaic_0001>
module attributes {stable_mosaic.version = 11 : i64} {
  func.func @_pitch_decoder_kernel(%arg0: i32, %arg1: memref<1x16x16xf32, #tpu.memory_space<vmem>>, %arg2: memref<640x32xf32, #tpu.memory_space<vmem>>, %arg3: memref<1x32xf32, #tpu.memory_space<vmem>>, %arg4: memref<640x32xf32, #tpu.memory_space<vmem>>, %arg5: memref<1x32xf32, #tpu.memory_space<vmem>>, %arg6: memref<384x16xf32, #tpu.memory_space<vmem>>, %arg7: memref<1x16xf32, #tpu.memory_space<vmem>>, %arg8: memref<384x8xf32, #tpu.memory_space<vmem>>, %arg9: memref<1x8xf32, #tpu.memory_space<vmem>>, %arg10: memref<1x8xf32, #tpu.memory_space<vmem>>, %arg11: memref<1x1xf32, #tpu.memory_space<vmem>>, %arg12: memref<1x1x16xf32, #tpu.memory_space<vmem>>, %arg13: memref<20x128xf32, #tpu.memory_space<vmem>>, %arg14: memref<16x640xf32, #tpu.memory_space<vmem>>) attributes {dimension_semantics = [#tpu.dimension_semantics<parallel>], iteration_bounds = array<i64: 2>, scalar_prefetch = 0 : i64, scratch_operands = 2 : i64, tpu.core_type = #tpu.core_type<tc>, window_params = [{transform_indices = @transform_0, window_bounds = array<i64: 1, 16, 16>}, {pipeline_mode = #tpu.pipeline_mode<synchronous>, transform_indices = @transform_1, window_bounds = array<i64: 640, 32>}, {pipeline_mode = #tpu.pipeline_mode<synchronous>, transform_indices = @transform_2, window_bounds = array<i64: 1, 32>}, {pipeline_mode = #tpu.pipeline_mode<synchronous>, transform_indices = @transform_3, window_bounds = array<i64: 640, 32>}, {pipeline_mode = #tpu.pipeline_mode<synchronous>, transform_indices = @transform_4, window_bounds = array<i64: 1, 32>}, {pipeline_mode = #tpu.pipeline_mode<synchronous>, transform_indices = @transform_5, window_bounds = array<i64: 384, 16>}, {pipeline_mode = #tpu.pipeline_mode<synchronous>, transform_indices = @transform_6, window_bounds = array<i64: 1, 16>}, {pipeline_mode = #tpu.pipeline_mode<synchronous>, transform_indices = @transform_7, window_bounds = array<i64: 384, 8>}, {pipeline_mode = #tpu.pipeline_mode<synchronous>, transform_indices = @transform_8, window_bounds = array<i64: 1, 8>}, {pipeline_mode = #tpu.pipeline_mode<synchronous>, transform_indices = @transform_9, window_bounds = array<i64: 1, 8>}, {pipeline_mode = #tpu.pipeline_mode<synchronous>, transform_indices = @transform_10, window_bounds = array<i64: 1, 1>}, {transform_indices = @transform_11, window_bounds = array<i64: 1, 1, 16>}]} {
    %cst = arith.constant 0.000000e+00 : f32
    %0 = vector.broadcast %cst : f32 to vector<20x128xf32>
    %c0 = arith.constant 0 : index
    %c0_0 = arith.constant 0 : index
    %1 = vector.load %arg13[%c0, %c0_0] : memref<20x128xf32, #tpu.memory_space<vmem>>, vector<20x128xf32>
    tpu.vector_store %arg13[%c0, %c0_0], %0 {strides = array<i32>} : memref<20x128xf32, #tpu.memory_space<vmem>>, vector<20x128xf32>,
    %c0_1 = arith.constant 0 : index
    %c0_2 = arith.constant 0 : index
    %c0_3 = arith.constant 0 : index
    %2 = vector.load %arg1[%c0_1, %c0_2, %c0_3] : memref<1x16x16xf32, #tpu.memory_space<vmem>>, vector<1x16x16xf32>
    %3 = vector.shape_cast %2 : vector<1x16x16xf32> to vector<16x16xf32>
    %4 = tpu.transpose %3, [1, 0] : vector<16x16xf32> -> vector<16x16xf32>
    %c2 = arith.constant 2 : index
    %c0_4 = arith.constant 0 : index
    %5 = vector.load %arg13[%c2, %c0_4] : memref<20x128xf32, #tpu.memory_space<vmem>>, vector<16x16xf32>
    tpu.vector_store %arg13[%c2, %c0_4], %4 {strides = array<i32>} : memref<20x128xf32, #tpu.memory_space<vmem>>, vector<16x16xf32>,
    %6 = vector.extract_strided_slice %4 {offsets = [1, 0], sizes = [1, 16], strides = [1, 1]} : vector<16x16xf32> to vector<1x16xf32>
    %c1 = arith.constant 1 : index
    %c0_5 = arith.constant 0 : index
    %7 = vector.load %arg13[%c1, %c0_5] : memref<20x128xf32, #tpu.memory_space<vmem>>, vector<1x16xf32>
    tpu.vector_store %arg13[%c1, %c0_5], %6 {strides = array<i32>} : memref<20x128xf32, #tpu.memory_space<vmem>>, vector<1x16xf32>,
    %8 = vector.extract_strided_slice %4 {offsets = [14, 0], sizes = [1, 16], strides = [1, 1]} : vector<16x16xf32> to vector<1x16xf32>
    %c18 = arith.constant 18 : index
    %c0_6 = arith.constant 0 : index
    %9 = vector.load %arg13[%c18, %c0_6] : memref<20x128xf32, #tpu.memory_space<vmem>>, vector<1x16xf32>
    tpu.vector_store %arg13[%c18, %c0_6], %8 {strides = array<i32>} : memref<20x128xf32, #tpu.memory_space<vmem>>, vector<1x16xf32>,
    %10 = vector.extract_strided_slice %4 {offsets = [2, 0], sizes = [1, 16], strides = [1, 1]} : vector<16x16xf32> to vector<1x16xf32>
    %c0_7 = arith.constant 0 : index
    %c0_8 = arith.constant 0 : index
    %11 = vector.load %arg13[%c0_7, %c0_8] : memref<20x128xf32, #tpu.memory_space<vmem>>, vector<1x16xf32>
    tpu.vector_store %arg13[%c0_7, %c0_8], %10 {strides = array<i32>} : memref<20x128xf32, #tpu.memory_space<vmem>>, vector<1x16xf32>,
    %12 = vector.extract_strided_slice %4 {offsets = [13, 0], sizes = [1, 16], strides = [1, 1]} : vector<16x16xf32> to vector<1x16xf32>
    %c19 = arith.constant 19 : index
    %c0_9 = arith.constant 0 : index
    %13 = vector.load %arg13[%c19, %c0_9] : memref<20x128xf32, #tpu.memory_space<vmem>>, vector<1x16xf32>
    tpu.vector_store %arg13[%c19, %c0_9], %12 {strides = array<i32>} : memref<20x128xf32, #tpu.memory_space<vmem>>, vector<1x16xf32>,
    %c0_10 = arith.constant 0 : index
    %c0_11 = arith.constant 0 : index
    %14 = vector.load %arg13[%c0_10, %c0_11] : memref<20x128xf32, #tpu.memory_space<vmem>>, vector<16x128xf32>
    %c0_12 = arith.constant 0 : index
    %c0_13 = arith.constant 0 : index
    %15 = vector.load %arg14[%c0_12, %c0_13] : memref<16x640xf32, #tpu.memory_space<vmem>>, vector<16x128xf32>
    tpu.vector_store %arg14[%c0_12, %c0_13], %14 {strides = array<i32>} : memref<16x640xf32, #tpu.memory_space<vmem>>, vector<16x128xf32>,
    %c1_14 = arith.constant 1 : index
    %c0_15 = arith.constant 0 : index
    %16 = vector.load %arg13[%c1_14, %c0_15] : memref<20x128xf32, #tpu.memory_space<vmem>>, vector<16x128xf32>
    %c0_16 = arith.constant 0 : index
    %c128 = arith.constant 128 : index
    %17 = vector.load %arg14[%c0_16, %c128] : memref<16x640xf32, #tpu.memory_space<vmem>>, vector<16x128xf32>
    tpu.vector_store %arg14[%c0_16, %c128], %16 {strides = array<i32>} : memref<16x640xf32, #tpu.memory_space<vmem>>, vector<16x128xf32>,
    %c2_17 = arith.constant 2 : index
    %c0_18 = arith.constant 0 : index
    %18 = vector.load %arg13[%c2_17, %c0_18] : memref<20x128xf32, #tpu.memory_space<vmem>>, vector<16x128xf32>
    %c0_19 = arith.constant 0 : index
    %c256 = arith.constant 256 : index
    %19 = vector.load %arg14[%c0_19, %c256] : memref<16x640xf32, #tpu.memory_space<vmem>>, vector<16x128xf32>
    tpu.vector_store %arg14[%c0_19, %c256], %18 {strides = array<i32>} : memref<16x640xf32, #tpu.memory_space<vmem>>, vector<16x128xf32>,
    %c3 = arith.constant 3 : index
    %c0_20 = arith.constant 0 : index
    %20 = vector.load %arg13[%c3, %c0_20] : memref<20x128xf32, #tpu.memory_space<vmem>>, vector<16x128xf32>
    %c0_21 = arith.constant 0 : index
    %c384 = arith.constant 384 : index
    %21 = vector.load %arg14[%c0_21, %c384] : memref<16x640xf32, #tpu.memory_space<vmem>>, vector<16x128xf32>
    tpu.vector_store %arg14[%c0_21, %c384], %20 {strides = array<i32>} : memref<16x640xf32, #tpu.memory_space<vmem>>, vector<16x128xf32>,
    %c4 = arith.constant 4 : index
    %c0_22 = arith.constant 0 : index
    %22 = vector.load %arg13[%c4, %c0_22] : memref<20x128xf32, #tpu.memory_space<vmem>>, vector<16x128xf32>
    %c0_23 = arith.constant 0 : index
    %c512 = arith.constant 512 : index
    %23 = vector.load %arg14[%c0_23, %c512] : memref<16x640xf32, #tpu.memory_space<vmem>>, vector<16x128xf32>
    tpu.vector_store %arg14[%c0_23, %c512], %22 {strides = array<i32>} : memref<16x640xf32, #tpu.memory_space<vmem>>, vector<16x128xf32>,
    %c0_24 = arith.constant 0 : index
    %c0_25 = arith.constant 0 : index
    %24 = vector.load %arg14[%c0_24, %c0_25] : memref<16x640xf32, #tpu.memory_space<vmem>>, vector<16x640xf32>
    %c0_26 = arith.constant 0 : index
    %c0_27 = arith.constant 0 : index
    %25 = vector.load %arg2[%c0_26, %c0_27] : memref<640x32xf32, #tpu.memory_space<vmem>>, vector<640x32xf32>
    %cst_28 = arith.constant dense<0.000000e+00> : vector<16x32xf32>
    %26 = tpu.matmul %24, %25, %cst_28 {dimension_numbers = #tpu.dot_dimension_numbers<[1], [0], [0], [1], [0, 0, 1, 1], [], []>} : vector<16x640xf32>, vector<640x32xf32>, vector<16x32xf32> -> vector<16x32xf32>
    %c0_29 = arith.constant 0 : index
    %c0_30 = arith.constant 0 : index
    %27 = vector.load %arg3[%c0_29, %c0_30] : memref<1x32xf32, #tpu.memory_space<vmem>>, vector<1x32xf32>
    %28 = vector.broadcast %27 : vector<1x32xf32> to vector<16x32xf32>
    %29 = arith.addf %26, %28 : vector<16x32xf32>
    %cst_31 = arith.constant 0.000000e+00 : f32
    %30 = vector.broadcast %cst_31 : f32 to vector<16x32xf32>
    %31 = arith.cmpf oge, %29, %30 : vector<16x32xf32>
    %cst_32 = arith.constant 0.00999999977 : f32
    %32 = vector.broadcast %cst_32 : f32 to vector<16x32xf32>
    %33 = arith.mulf %32, %29 : vector<16x32xf32>
    %34 = arith.select %31, %29, %33 : vector<16x32xi1>, vector<16x32xf32>
    %c2_33 = arith.constant 2 : index
    %c0_34 = arith.constant 0 : index
    %35 = vector.load %arg13[%c2_33, %c0_34] : memref<20x128xf32, #tpu.memory_space<vmem>>, vector<16x32xf32>
    tpu.vector_store %arg13[%c2_33, %c0_34], %34 {strides = array<i32>} : memref<20x128xf32, #tpu.memory_space<vmem>>, vector<16x32xf32>,
    %36 = vector.extract_strided_slice %34 {offsets = [1, 0], sizes = [1, 32], strides = [1, 1]} : vector<16x32xf32> to vector<1x32xf32>
    %c1_35 = arith.constant 1 : index
    %c0_36 = arith.constant 0 : index
    %37 = vector.load %arg13[%c1_35, %c0_36] : memref<20x128xf32, #tpu.memory_space<vmem>>, vector<1x32xf32>
    tpu.vector_store %arg13[%c1_35, %c0_36], %36 {strides = array<i32>} : memref<20x128xf32, #tpu.memory_space<vmem>>, vector<1x32xf32>,
    %38 = vector.extract_strided_slice %34 {offsets = [14, 0], sizes = [1, 32], strides = [1, 1]} : vector<16x32xf32> to vector<1x32xf32>
    %c18_37 = arith.constant 18 : index
    %c0_38 = arith.constant 0 : index
    %39 = vector.load %arg13[%c18_37, %c0_38] : memref<20x128xf32, #tpu.memory_space<vmem>>, vector<1x32xf32>
    tpu.vector_store %arg13[%c18_37, %c0_38], %38 {strides = array<i32>} : memref<20x128xf32, #tpu.memory_space<vmem>>, vector<1x32xf32>,
    %40 = vector.extract_strided_slice %34 {offsets = [2, 0], sizes = [1, 32], strides = [1, 1]} : vector<16x32xf32> to vector<1x32xf32>
    %c0_39 = arith.constant 0 : index
    %c0_40 = arith.constant 0 : index
    %41 = vector.load %arg13[%c0_39, %c0_40] : memref<20x128xf32, #tpu.memory_space<vmem>>, vector<1x32xf32>
    tpu.vector_store %arg13[%c0_39, %c0_40], %40 {strides = array<i32>} : memref<20x128xf32, #tpu.memory_space<vmem>>, vector<1x32xf32>,
    %42 = vector.extract_strided_slice %34 {offsets = [13, 0], sizes = [1, 32], strides = [1, 1]} : vector<16x32xf32> to vector<1x32xf32>
    %c19_41 = arith.constant 19 : index
    %c0_42 = arith.constant 0 : index
    %43 = vector.load %arg13[%c19_41, %c0_42] : memref<20x128xf32, #tpu.memory_space<vmem>>, vector<1x32xf32>
    tpu.vector_store %arg13[%c19_41, %c0_42], %42 {strides = array<i32>} : memref<20x128xf32, #tpu.memory_space<vmem>>, vector<1x32xf32>,
    %c0_43 = arith.constant 0 : index
    %c0_44 = arith.constant 0 : index
    %44 = vector.load %arg13[%c0_43, %c0_44] : memref<20x128xf32, #tpu.memory_space<vmem>>, vector<16x128xf32>
    %c0_45 = arith.constant 0 : index
    %c0_46 = arith.constant 0 : index
    %45 = vector.load %arg14[%c0_45, %c0_46] : memref<16x640xf32, #tpu.memory_space<vmem>>, vector<16x128xf32>
    tpu.vector_store %arg14[%c0_45, %c0_46], %44 {strides = array<i32>} : memref<16x640xf32, #tpu.memory_space<vmem>>, vector<16x128xf32>,
    %c1_47 = arith.constant 1 : index
    %c0_48 = arith.constant 0 : index
    %46 = vector.load %arg13[%c1_47, %c0_48] : memref<20x128xf32, #tpu.memory_space<vmem>>, vector<16x128xf32>
    %c0_49 = arith.constant 0 : index
    %c128_50 = arith.constant 128 : index
    %47 = vector.load %arg14[%c0_49, %c128_50] : memref<16x640xf32, #tpu.memory_space<vmem>>, vector<16x128xf32>
    tpu.vector_store %arg14[%c0_49, %c128_50], %46 {strides = array<i32>} : memref<16x640xf32, #tpu.memory_space<vmem>>, vector<16x128xf32>,
    %c2_51 = arith.constant 2 : index
    %c0_52 = arith.constant 0 : index
    %48 = vector.load %arg13[%c2_51, %c0_52] : memref<20x128xf32, #tpu.memory_space<vmem>>, vector<16x128xf32>
    %c0_53 = arith.constant 0 : index
    %c256_54 = arith.constant 256 : index
    %49 = vector.load %arg14[%c0_53, %c256_54] : memref<16x640xf32, #tpu.memory_space<vmem>>, vector<16x128xf32>
    tpu.vector_store %arg14[%c0_53, %c256_54], %48 {strides = array<i32>} : memref<16x640xf32, #tpu.memory_space<vmem>>, vector<16x128xf32>,
    %c3_55 = arith.constant 3 : index
    %c0_56 = arith.constant 0 : index
    %50 = vector.load %arg13[%c3_55, %c0_56] : memref<20x128xf32, #tpu.memory_space<vmem>>, vector<16x128xf32>
    %c0_57 = arith.constant 0 : index
    %c384_58 = arith.constant 384 : index
    %51 = vector.load %arg14[%c0_57, %c384_58] : memref<16x640xf32, #tpu.memory_space<vmem>>, vector<16x128xf32>
    tpu.vector_store %arg14[%c0_57, %c384_58], %50 {strides = array<i32>} : memref<16x640xf32, #tpu.memory_space<vmem>>, vector<16x128xf32>,
    %c4_59 = arith.constant 4 : index
    %c0_60 = arith.constant 0 : index
    %52 = vector.load %arg13[%c4_59, %c0_60] : memref<20x128xf32, #tpu.memory_space<vmem>>, vector<16x128xf32>
    %c0_61 = arith.constant 0 : index
    %c512_62 = arith.constant 512 : index
    %53 = vector.load %arg14[%c0_61, %c512_62] : memref<16x640xf32, #tpu.memory_space<vmem>>, vector<16x128xf32>
    tpu.vector_store %arg14[%c0_61, %c512_62], %52 {strides = array<i32>} : memref<16x640xf32, #tpu.memory_space<vmem>>, vector<16x128xf32>,
    %c0_63 = arith.constant 0 : index
    %c0_64 = arith.constant 0 : index
    %54 = vector.load %arg14[%c0_63, %c0_64] : memref<16x640xf32, #tpu.memory_space<vmem>>, vector<16x640xf32>
    %c0_65 = arith.constant 0 : index
    %c0_66 = arith.constant 0 : index
    %55 = vector.load %arg4[%c0_65, %c0_66] : memref<640x32xf32, #tpu.memory_space<vmem>>, vector<640x32xf32>
    %cst_67 = arith.constant dense<0.000000e+00> : vector<16x32xf32>
    %56 = tpu.matmul %54, %55, %cst_67 {dimension_numbers = #tpu.dot_dimension_numbers<[1], [0], [0], [1], [0, 0, 1, 1], [], []>} : vector<16x640xf32>, vector<640x32xf32>, vector<16x32xf32> -> vector<16x32xf32>
    %c0_68 = arith.constant 0 : index
    %c0_69 = arith.constant 0 : index
    %57 = vector.load %arg5[%c0_68, %c0_69] : memref<1x32xf32, #tpu.memory_space<vmem>>, vector<1x32xf32>
    %58 = vector.broadcast %57 : vector<1x32xf32> to vector<16x32xf32>
    %59 = arith.addf %56, %58 : vector<16x32xf32>
    %cst_70 = arith.constant 0.000000e+00 : f32
    %60 = vector.broadcast %cst_70 : f32 to vector<16x32xf32>
    %61 = arith.cmpf oge, %59, %60 : vector<16x32xf32>
    %cst_71 = arith.constant 0.00999999977 : f32
    %62 = vector.broadcast %cst_71 : f32 to vector<16x32xf32>
    %63 = arith.mulf %62, %59 : vector<16x32xf32>
    %64 = arith.select %61, %59, %63 : vector<16x32xi1>, vector<16x32xf32>
    %c1_72 = arith.constant 1 : index
    %c0_73 = arith.constant 0 : index
    %65 = vector.load %arg13[%c1_72, %c0_73] : memref<20x128xf32, #tpu.memory_space<vmem>>, vector<16x32xf32>
    tpu.vector_store %arg13[%c1_72, %c0_73], %64 {strides = array<i32>} : memref<20x128xf32, #tpu.memory_space<vmem>>, vector<16x32xf32>,
    %66 = vector.extract_strided_slice %64 {offsets = [1, 0], sizes = [1, 32], strides = [1, 1]} : vector<16x32xf32> to vector<1x32xf32>
    %c0_74 = arith.constant 0 : index
    %c0_75 = arith.constant 0 : index
    %67 = vector.load %arg13[%c0_74, %c0_75] : memref<20x128xf32, #tpu.memory_space<vmem>>, vector<1x32xf32>
    tpu.vector_store %arg13[%c0_74, %c0_75], %66 {strides = array<i32>} : memref<20x128xf32, #tpu.memory_space<vmem>>, vector<1x32xf32>,
    %68 = vector.extract_strided_slice %64 {offsets = [14, 0], sizes = [1, 32], strides = [1, 1]} : vector<16x32xf32> to vector<1x32xf32>
    %c17 = arith.constant 17 : index
    %c0_76 = arith.constant 0 : index
    %69 = vector.load %arg13[%c17, %c0_76] : memref<20x128xf32, #tpu.memory_space<vmem>>, vector<1x32xf32>
    tpu.vector_store %arg13[%c17, %c0_76], %68 {strides = array<i32>} : memref<20x128xf32, #tpu.memory_space<vmem>>, vector<1x32xf32>,
    %c0_77 = arith.constant 0 : index
    %c0_78 = arith.constant 0 : index
    %70 = vector.load %arg13[%c0_77, %c0_78] : memref<20x128xf32, #tpu.memory_space<vmem>>, vector<16x128xf32>
    %c0_79 = arith.constant 0 : index
    %c0_80 = arith.constant 0 : index
    %71 = vector.load %arg14[%c0_79, %c0_80] : memref<16x640xf32, #tpu.memory_space<vmem>>, vector<16x128xf32>
    tpu.vector_store %arg14[%c0_79, %c0_80], %70 {strides = array<i32>} : memref<16x640xf32, #tpu.memory_space<vmem>>, vector<16x128xf32>,
    %c1_81 = arith.constant 1 : index
    %c0_82 = arith.constant 0 : index
    %72 = vector.load %arg13[%c1_81, %c0_82] : memref<20x128xf32, #tpu.memory_space<vmem>>, vector<16x128xf32>
    %c0_83 = arith.constant 0 : index
    %c128_84 = arith.constant 128 : index
    %73 = vector.load %arg14[%c0_83, %c128_84] : memref<16x640xf32, #tpu.memory_space<vmem>>, vector<16x128xf32>
    tpu.vector_store %arg14[%c0_83, %c128_84], %72 {strides = array<i32>} : memref<16x640xf32, #tpu.memory_space<vmem>>, vector<16x128xf32>,
    %c2_85 = arith.constant 2 : index
    %c0_86 = arith.constant 0 : index
    %74 = vector.load %arg13[%c2_85, %c0_86] : memref<20x128xf32, #tpu.memory_space<vmem>>, vector<16x128xf32>
    %c0_87 = arith.constant 0 : index
    %c256_88 = arith.constant 256 : index
    %75 = vector.load %arg14[%c0_87, %c256_88] : memref<16x640xf32, #tpu.memory_space<vmem>>, vector<16x128xf32>
    tpu.vector_store %arg14[%c0_87, %c256_88], %74 {strides = array<i32>} : memref<16x640xf32, #tpu.memory_space<vmem>>, vector<16x128xf32>,
    %c0_89 = arith.constant 0 : index
    %c0_90 = arith.constant 0 : index
    %76 = vector.load %arg14[%c0_89, %c0_90] : memref<16x640xf32, #tpu.memory_space<vmem>>, vector<16x384xf32>
    %c0_91 = arith.constant 0 : index
    %c0_92 = arith.constant 0 : index
    %77 = vector.load %arg6[%c0_91, %c0_92] : memref<384x16xf32, #tpu.memory_space<vmem>>, vector<384x16xf32>
    %cst_93 = arith.constant dense<0.000000e+00> : vector<16x16xf32>
    %78 = tpu.matmul %76, %77, %cst_93 {dimension_numbers = #tpu.dot_dimension_numbers<[1], [0], [0], [1], [0, 0, 1, 1], [], []>} : vector<16x384xf32>, vector<384x16xf32>, vector<16x16xf32> -> vector<16x16xf32>
    %c0_94 = arith.constant 0 : index
    %c0_95 = arith.constant 0 : index
    %79 = vector.load %arg7[%c0_94, %c0_95] : memref<1x16xf32, #tpu.memory_space<vmem>>, vector<1x16xf32>
    %80 = vector.broadcast %79 : vector<1x16xf32> to vector<16x16xf32>
    %81 = arith.addf %78, %80 : vector<16x16xf32>
    %cst_96 = arith.constant 0.000000e+00 : f32
    %82 = vector.broadcast %cst_96 : f32 to vector<16x16xf32>
    %83 = arith.cmpf oge, %81, %82 : vector<16x16xf32>
    %cst_97 = arith.constant 0.00999999977 : f32
    %84 = vector.broadcast %cst_97 : f32 to vector<16x16xf32>
    %85 = arith.mulf %84, %81 : vector<16x16xf32>
    %86 = arith.select %83, %81, %85 : vector<16x16xi1>, vector<16x16xf32>
    %c1_98 = arith.constant 1 : index
    %c0_99 = arith.constant 0 : index
    %87 = vector.load %arg13[%c1_98, %c0_99] : memref<20x128xf32, #tpu.memory_space<vmem>>, vector<16x16xf32>
    tpu.vector_store %arg13[%c1_98, %c0_99], %86 {strides = array<i32>} : memref<20x128xf32, #tpu.memory_space<vmem>>, vector<16x16xf32>,
    %88 = vector.extract_strided_slice %86 {offsets = [1, 0], sizes = [1, 16], strides = [1, 1]} : vector<16x16xf32> to vector<1x16xf32>
    %c0_100 = arith.constant 0 : index
    %c0_101 = arith.constant 0 : index
    %89 = vector.load %arg13[%c0_100, %c0_101] : memref<20x128xf32, #tpu.memory_space<vmem>>, vector<1x16xf32>
    tpu.vector_store %arg13[%c0_100, %c0_101], %88 {strides = array<i32>} : memref<20x128xf32, #tpu.memory_space<vmem>>, vector<1x16xf32>,
    %90 = vector.extract_strided_slice %86 {offsets = [14, 0], sizes = [1, 16], strides = [1, 1]} : vector<16x16xf32> to vector<1x16xf32>
    %c17_102 = arith.constant 17 : index
    %c0_103 = arith.constant 0 : index
    %91 = vector.load %arg13[%c17_102, %c0_103] : memref<20x128xf32, #tpu.memory_space<vmem>>, vector<1x16xf32>
    tpu.vector_store %arg13[%c17_102, %c0_103], %90 {strides = array<i32>} : memref<20x128xf32, #tpu.memory_space<vmem>>, vector<1x16xf32>,
    %c0_104 = arith.constant 0 : index
    %c0_105 = arith.constant 0 : index
    %92 = vector.load %arg13[%c0_104, %c0_105] : memref<20x128xf32, #tpu.memory_space<vmem>>, vector<16x128xf32>
    %c0_106 = arith.constant 0 : index
    %c0_107 = arith.constant 0 : index
    %93 = vector.load %arg14[%c0_106, %c0_107] : memref<16x640xf32, #tpu.memory_space<vmem>>, vector<16x128xf32>
    tpu.vector_store %arg14[%c0_106, %c0_107], %92 {strides = array<i32>} : memref<16x640xf32, #tpu.memory_space<vmem>>, vector<16x128xf32>,
    %c1_108 = arith.constant 1 : index
    %c0_109 = arith.constant 0 : index
    %94 = vector.load %arg13[%c1_108, %c0_109] : memref<20x128xf32, #tpu.memory_space<vmem>>, vector<16x128xf32>
    %c0_110 = arith.constant 0 : index
    %c128_111 = arith.constant 128 : index
    %95 = vector.load %arg14[%c0_110, %c128_111] : memref<16x640xf32, #tpu.memory_space<vmem>>, vector<16x128xf32>
    tpu.vector_store %arg14[%c0_110, %c128_111], %94 {strides = array<i32>} : memref<16x640xf32, #tpu.memory_space<vmem>>, vector<16x128xf32>,
    %c2_112 = arith.constant 2 : index
    %c0_113 = arith.constant 0 : index
    %96 = vector.load %arg13[%c2_112, %c0_113] : memref<20x128xf32, #tpu.memory_space<vmem>>, vector<16x128xf32>
    %c0_114 = arith.constant 0 : index
    %c256_115 = arith.constant 256 : index
    %97 = vector.load %arg14[%c0_114, %c256_115] : memref<16x640xf32, #tpu.memory_space<vmem>>, vector<16x128xf32>
    tpu.vector_store %arg14[%c0_114, %c256_115], %96 {strides = array<i32>} : memref<16x640xf32, #tpu.memory_space<vmem>>, vector<16x128xf32>,
    %c0_116 = arith.constant 0 : index
    %c0_117 = arith.constant 0 : index
    %98 = vector.load %arg14[%c0_116, %c0_117] : memref<16x640xf32, #tpu.memory_space<vmem>>, vector<16x384xf32>
    %c0_118 = arith.constant 0 : index
    %c0_119 = arith.constant 0 : index
    %99 = vector.load %arg8[%c0_118, %c0_119] : memref<384x8xf32, #tpu.memory_space<vmem>>, vector<384x8xf32>
    %cst_120 = arith.constant dense<0.000000e+00> : vector<16x8xf32>
    %100 = tpu.matmul %98, %99, %cst_120 {dimension_numbers = #tpu.dot_dimension_numbers<[1], [0], [0], [1], [0, 0, 1, 1], [], []>} : vector<16x384xf32>, vector<384x8xf32>, vector<16x8xf32> -> vector<16x8xf32>
    %c0_121 = arith.constant 0 : index
    %c0_122 = arith.constant 0 : index
    %101 = vector.load %arg9[%c0_121, %c0_122] : memref<1x8xf32, #tpu.memory_space<vmem>>, vector<1x8xf32>
    %102 = vector.broadcast %101 : vector<1x8xf32> to vector<16x8xf32>
    %103 = arith.addf %100, %102 : vector<16x8xf32>
    %cst_123 = arith.constant 0.000000e+00 : f32
    %104 = vector.broadcast %cst_123 : f32 to vector<16x8xf32>
    %105 = arith.cmpf oge, %103, %104 : vector<16x8xf32>
    %cst_124 = arith.constant 0.00999999977 : f32
    %106 = vector.broadcast %cst_124 : f32 to vector<16x8xf32>
    %107 = arith.mulf %106, %103 : vector<16x8xf32>
    %108 = arith.select %105, %103, %107 : vector<16x8xi1>, vector<16x8xf32>
    %c0_125 = arith.constant 0 : index
    %c0_126 = arith.constant 0 : index
    %109 = vector.load %arg10[%c0_125, %c0_126] : memref<1x8xf32, #tpu.memory_space<vmem>>, vector<1x8xf32>
    %cst_127 = arith.constant dense<0.000000e+00> : vector<1x16xf32>
    %110 = tpu.matmul %109, %108, %cst_127 {dimension_numbers = #tpu.dot_dimension_numbers<[1], [1], [0], [0], [0, 0, 1, 0], [], []>} : vector<1x8xf32>, vector<16x8xf32>, vector<1x16xf32> -> vector<1x16xf32>
    %c0_128 = arith.constant 0 : index
    %c0_129 = arith.constant 0 : index
    %111 = vector.load %arg11[%c0_128, %c0_129] : memref<1x1xf32, #tpu.memory_space<vmem>>, vector<1x1xf32>
    %112 = vector.broadcast %111 : vector<1x1xf32> to vector<1x16xf32>
    %113 = arith.addf %110, %112 : vector<1x16xf32>
    %c0_130 = arith.constant 0 : index
    %c0_131 = arith.constant 0 : index
    %c0_132 = arith.constant 0 : index
    %114 = vector.load %arg12[%c0_130, %c0_131, %c0_132] : memref<1x1x16xf32, #tpu.memory_space<vmem>>, vector<1x1x16xf32>
    %115 = vector.shape_cast %114 : vector<1x1x16xf32> to vector<1x16xf32>
    %116 = vector.shape_cast %113 : vector<1x16xf32> to vector<1x1x16xf32>
    tpu.vector_store %arg12[%c0_130, %c0_131, %c0_132], %116 {strides = array<i32>} : memref<1x1x16xf32, #tpu.memory_space<vmem>>, vector<1x1x16xf32>,
    return
  }
  func.func @transform_0(%arg0: i32) -> (i32, i32, i32) {
    %c0_i32 = arith.constant 0 : i32
    %c0_i32_0 = arith.constant 0 : i32
    %c0_i32_1 = arith.constant 0 : i32
    return %arg0, %c0_i32, %c0_i32_0 : i32, i32, i32
  }
  func.func @transform_1(%arg0: i32) -> (i32, i32) {
    %c0_i32 = arith.constant 0 : i32
    %c0_i32_0 = arith.constant 0 : i32
    %c0_i32_1 = arith.constant 0 : i32
    return %c0_i32, %c0_i32_0 : i32, i32
  }
  func.func @transform_2(%arg0: i32) -> (i32, i32) {
    %c0_i32 = arith.constant 0 : i32
    %c0_i32_0 = arith.constant 0 : i32
    %c0_i32_1 = arith.constant 0 : i32
    return %c0_i32, %c0_i32_0 : i32, i32
  }
  func.func @transform_3(%arg0: i32) -> (i32, i32) {
    %c0_i32 = arith.constant 0 : i32
    %c0_i32_0 = arith.constant 0 : i32
    %c0_i32_1 = arith.constant 0 : i32
    return %c0_i32, %c0_i32_0 : i32, i32
  }
  func.func @transform_4(%arg0: i32) -> (i32, i32) {
    %c0_i32 = arith.constant 0 : i32
    %c0_i32_0 = arith.constant 0 : i32
    %c0_i32_1 = arith.constant 0 : i32
    return %c0_i32, %c0_i32_0 : i32, i32
  }
  func.func @transform_5(%arg0: i32) -> (i32, i32) {
    %c0_i32 = arith.constant 0 : i32
    %c0_i32_0 = arith.constant 0 : i32
    %c0_i32_1 = arith.constant 0 : i32
    return %c0_i32, %c0_i32_0 : i32, i32
  }
  func.func @transform_6(%arg0: i32) -> (i32, i32) {
    %c0_i32 = arith.constant 0 : i32
    %c0_i32_0 = arith.constant 0 : i32
    %c0_i32_1 = arith.constant 0 : i32
    return %c0_i32, %c0_i32_0 : i32, i32
  }
  func.func @transform_7(%arg0: i32) -> (i32, i32) {
    %c0_i32 = arith.constant 0 : i32
    %c0_i32_0 = arith.constant 0 : i32
    %c0_i32_1 = arith.constant 0 : i32
    return %c0_i32, %c0_i32_0 : i32, i32
  }
  func.func @transform_8(%arg0: i32) -> (i32, i32) {
    %c0_i32 = arith.constant 0 : i32
    %c0_i32_0 = arith.constant 0 : i32
    %c0_i32_1 = arith.constant 0 : i32
    return %c0_i32, %c0_i32_0 : i32, i32
  }
  func.func @transform_9(%arg0: i32) -> (i32, i32) {
    %c0_i32 = arith.constant 0 : i32
    %c0_i32_0 = arith.constant 0 : i32
    %c0_i32_1 = arith.constant 0 : i32
    return %c0_i32, %c0_i32_0 : i32, i32
  }
  func.func @transform_10(%arg0: i32) -> (i32, i32) {
    %c0_i32 = arith.constant 0 : i32
    %c0_i32_0 = arith.constant 0 : i32
    %c0_i32_1 = arith.constant 0 : i32
    return %c0_i32, %c0_i32_0 : i32, i32
  }
  func.func @transform_11(%arg0: i32) -> (i32, i32, i32) {
    %c0_i32 = arith.constant 0 : i32
    %c0_i32_0 = arith.constant 0 : i32
    %c0_i32_1 = arith.constant 0 : i32
    return %arg0, %c0_i32, %c0_i32_0 : i32, i32, i32
  }
}

</mosaic_0001>

<bundles_post_ra>
// kernel: tpu_custom_call.1
= control target key start
LH: loop header
LB: loop body
LE: loop exit
PB: predicated region body
PF: predicated region fallthrough
CT: control target
= control target key end

     0   :  { %s3827_s0 = inlined_call_operand.hbm [shape: f32[2,16,16], index: 0, kind: input, shape index: {}]   ;;  %s3828_s1 = inlined_call_operand.hbm [shape: f32[640,32], index: 1, kind: input, shape index: {}]   ;;  %s3829_s2 = inlined_call_operand.hbm [shape: f32[1,32], index: 2, kind: input, shape index: {}]   ;;  %s3830_s3 = inlined_call_operand.hbm [shape: f32[640,32], index: 3, kind: input, shape index: {}]   ;;  %s3831_s4 = inlined_call_operand.hbm [shape: f32[1,32], index: 4, kind: input, shape index: {}]   ;;  %s3832_s5 = inlined_call_operand.hbm [shape: f32[384,16], index: 5, kind: input, shape index: {}]   ;;  %s3833_s6 = inlined_call_operand.hbm [shape: f32[1,16], index: 6, kind: input, shape index: {}]   ;;  %s3834_s7 = inlined_call_operand.hbm [shape: f32[384,8], index: 7, kind: input, shape index: {}]   ;;  %s3835_s8 = inlined_call_operand.hbm [shape: f32[1,8], index: 8, kind: input, shape index: {}]   ;;  %s3836_s9 = inlined_call_operand.hbm [shape: f32[1,8], index: 9, kind: input, shape index: {}]   ;;  %s3837_s10 = inlined_call_operand.<no memory space> [shape: f32[1,1], index: 10, kind: input, shape index: {}]   ;;  %s3838_s11 = inlined_call_operand.hbm [shape: f32[2,1,16], index: 11, kind: output, shape index: {}]  }
   0x1   :  { %3845 = sst [smem:[#allocation31_spill]] %s3828_s1  ;;  %v16_v0 = vstv %s3837_s10 }
   0x2   :  { %3846 = sst [smem:[#allocation32_spill]] %s3838_s11  ;;  %17 = vst [vmem:[#allocation4] sm:$0x1] %v16_v0 }
   0x3   :  { %18 = vsyncpa [#allocation6], 0 }
   0x4   :  { %20 = vsyncpa [#allocation6 + $0x1], 0 }
   0x5   :  { %21 = vsyncpa [#allocation9], 0 }
   0x6   :  { %22 = vsyncpa [#allocation12], 0 }
   0x7   :  { %23 = vsyncpa [#allocation15], 0 }
   0x8   :  { %24 = vsyncpa [#allocation18], 0 }
   0x9   :  { %25 = vsyncpa [#allocation21], 0 }
   0xa   :  { %26 = vsyncpa [#allocation7], 0 }
   0xb   :  { %28 = vsyncpa [#allocation7 + $0x1], 0  ;;  %s3412_s19 = smov 0   ;;  %s3414_s20 = smov 0  }
   0xc   :  { %s3416_s21 = smov 0   ;;  %s3418_s22 = smov 0  }
   0xd LB: > { %s3332_s10 = smov [#allocation8]   ;;  %s3433_s24 = sadd.s32 4294967295, %s3330_s22   ;;  %s3330_s22 = sphi %s3418_s22, %s3877_s22   ;;  %s3326_s21 = sphi %s3416_s21, %s3876_s21   ;;  %s3322_s20 = sphi %s3414_s20, %s3875_s20   ;;  %s3318_s19 = sphi %s3412_s19, %s3874_s19  }
   0xe   : > { %s313_s23 = sshll.u32 %s3332_s10, 4  ;;  %p2007_p0 = scmp.ge.s32.totalorder %s3330_s22, 1  ;;  %s3438_s23 = int_to_ptr.vmem [resolvable:$true] %s313_s23 }
   0xf   : > { %p3841_p1 = scmp.eq.s32.totalorder %s3433_s24, 0  ;;  %p301_p2 = scmp.lt.s32.totalorder %s3330_s22, 3 }
  0x10   : > { %s3333_s26 = smov [#allocation11]   ;;  %s3334_s29 = smov [#allocation14]  }
  0x11   : > { %p3440_p3 = pnand %p2007_p0, %p301_p2  ;;  %s337_s27 = sshll.u32 %s3333_s26, 4  ;;  %s3453_s27 = int_to_ptr.vmem [resolvable:$true] %s337_s27 }
  0x12   : > { %s361_s30 = sshll.u32 %s3334_s29, 4  ;;  %s3850_s1 = sld [smem:[#allocation31_spill]]  ;;  %s3455_s30 = int_to_ptr.vmem [resolvable:$true] %s361_s30 }
  0x13   : > { %s3847_s25 = scalar_select %p3440_p3, 1, 0 }
  0x14   : > { %p2857_p5 = pneg %p3440_p3 }
  0x15   : > { %3848 = sst [smem:[#allocation30_spill]] %s3847_s25 }
  0x16   : > { %p3449_p6 = pnand %p2857_p5, %p3841_p1 }
  0x18   : > { %s2962_s14 = scalar_lea.hbm %s3850_s1, 10240  ;;  %p3465_p8 = pneg %p3449_p6 }
  0x19   : > { %p2963_p7 = scmp.ne.s32.totalorder %s3850_s1, %s2962_s14  ;;  %p2969_p11 = scmp.lt.u32.totalorder %s2962_s14, %s3850_s1 }
  0x1b   : > { %p2965_p9 = pnand %p3465_p8, %p2963_p7 }
  0x1d   : > { %p2966_p10 = pneg %p2965_p9 }
  0x1f   : > { %p2971_p12 = pnand %p2969_p11, %p2966_p10 }
  0x21   : > { %2974 = shalt.err (!%p2971_p12)
}
  0x22   : > { %s2975_s26 = scalar_lea.vmem %s3438_s23, 10240  ;;  %p2983_p5 = scmp.lt.s32.totalorder %s3438_s23, %s3438_s23 }
  0x23   : > { %p2976_p13 = scmp.ne.s32.totalorder %s3438_s23, %s2975_s26  ;;  %p2984_p4 = scmp.lt.s32.totalorder %s2975_s26, %s2975_s26 }
  0x25   : > { %p2978_p0 = pnand %p2976_p13, %p3465_p8  ;;  %p2985_p7 = por %p2984_p4, %p2983_p5 }
  0x27   : > { %p2979_p2 = pneg %p2978_p0 }
  0x29   : > { %p2986_p9 = pnand %p2985_p7, %p2979_p2 }
  0x2b   : > { %2989 = shalt.err (!%p2986_p9)
}
  0x2c   : > { %s3843_s29 = smov 128   ;;  %s3336_s12 = smov 8  }
  0x2d   : > { %2860 = dma.hbm_to_vmem [thread:$0]  (!%p3449_p6), %s3850_s1, 10240, %s3438_s23, [#allocation9], %s3843_s29, %s3843_s29, %s3336_s12  }
  0x2e   : > { %s2990_s18 = scalar_lea.hbm %s3830_s3, 10240 }
  0x2f   : > { %p2991_p4 = scmp.ne.s32.totalorder %s3830_s3, %s2990_s18  ;;  %p2997_p12 = scmp.lt.u32.totalorder %s2990_s18, %s3830_s3 }
  0x31   : > { %p2993_p10 = pnand %p2991_p4, %p3465_p8 }
  0x33   : > { %p2994_p11 = pneg %p2993_p10 }
  0x35   : > { %p2999_p13 = pnand %p2997_p12, %p2994_p11 }
  0x37   : > { %3002 = shalt.err (!%p2999_p13)
}
  0x38   : > { %s3003_s23 = scalar_lea.vmem %s3453_s27, 10240  ;;  %p3011_p7 = scmp.lt.s32.totalorder %s3453_s27, %s3453_s27 }
  0x39   : > { %p3004_p0 = scmp.ne.s32.totalorder %s3453_s27, %s3003_s23  ;;  %p3012_p9 = scmp.lt.s32.totalorder %s3003_s23, %s3003_s23 }
  0x3b   : > { %p3006_p2 = pnand %p3004_p0, %p3465_p8  ;;  %p3013_p4 = por %p3012_p9, %p3011_p7 }
  0x3d   : > { %p3007_p5 = pneg %p3006_p2 }
  0x3f   : > { %p3014_p10 = pnand %p3013_p4, %p3007_p5 }
  0x41   : > { %3017 = shalt.err (!%p3014_p10)
}
  0x42   : > { %2866 = dma.hbm_to_vmem [thread:$0]  (!%p3449_p6), %s3830_s3, 10240, %s3453_s27, [#allocation12], %s3843_s29, %s3843_s29, %s3336_s12  }
  0x43   : > { %s3018_s15 = scalar_lea.hbm %s3832_s5, 6144 }
  0x44   : > { %p3019_p11 = scmp.ne.s32.totalorder %s3832_s5, %s3018_s15  ;;  %p3025_p0 = scmp.lt.u32.totalorder %s3018_s15, %s3832_s5 }
  0x46   : > { %p3021_p12 = pnand %p3019_p11, %p3465_p8 }
  0x48   : > { %p3022_p13 = pneg %p3021_p12 }
  0x4a   : > { %p3027_p2 = pnand %p3025_p0, %p3022_p13 }
  0x4c   : > { %3030 = shalt.err (!%p3027_p2)
}
  0x4d   : > { %s3031_s27 = scalar_lea.vmem %s3455_s30, 6144  ;;  %p3039_p4 = scmp.lt.s32.totalorder %s3455_s30, %s3455_s30 }
  0x4e   : > { %p3032_p5 = scmp.ne.s32.totalorder %s3455_s30, %s3031_s27  ;;  %p3040_p10 = scmp.lt.s32.totalorder %s3031_s27, %s3031_s27 }
  0x50   : > { %p3034_p7 = pnand %p3032_p5, %p3465_p8  ;;  %p3041_p11 = por %p3040_p10, %p3039_p4 }
  0x52   : > { %p3035_p9 = pneg %p3034_p7 }
  0x54   : > { %p3042_p12 = pnand %p3041_p11, %p3035_p9 }
  0x56   : > { %3045 = shalt.err (!%p3042_p12)
}
  0x57   : > { %2872 = dma.hbm_to_vmem [thread:$0]  (!%p3449_p6), %s3832_s5, 6144, %s3455_s30, [#allocation15], %s3843_s29, %s3843_s29, %s3336_s12  }
  0x58   : > { %s3337_s25 = smov [#allocation17]   ;;  %s3338_s14 = smov [#allocation10]  }
  0x59   : > { %s385_s13 = sshll.u32 %s3337_s25, 4  ;;  %s327_s15 = sshll.u32 %s3338_s14, 4  ;;  %s386_s13 = int_to_ptr.vmem [resolvable:$true] %s385_s13  ;;  %s328_s15 = int_to_ptr.vmem [resolvable:$true] %s327_s15 }
  0x5a   : > { %s3046_s10 = scalar_lea.hbm %s3834_s7, 6144 }
  0x5b   : > { %p3047_p13 = scmp.ne.s32.totalorder %s3834_s7, %s3046_s10  ;;  %p3053_p5 = scmp.lt.u32.totalorder %s3046_s10, %s3834_s7 }
  0x5d   : > { %p3049_p0 = pnand %p3047_p13, %p3465_p8 }
  0x5f   : > { %p3050_p2 = pneg %p3049_p0 }
  0x61   : > { %p3055_p7 = pnand %p3053_p5, %p3050_p2 }
  0x63   : > { %3058 = shalt.err (!%p3055_p7)
}
  0x64   : > { %s3059_s30 = scalar_lea.vmem %s386_s13, 6144  ;;  %p3067_p11 = scmp.lt.s32.totalorder %s386_s13, %s386_s13 }
  0x65   : > { %p3060_p9 = scmp.ne.s32.totalorder %s386_s13, %s3059_s30  ;;  %p3068_p12 = scmp.lt.s32.totalorder %s3059_s30, %s3059_s30 }
  0x67   : > { %p3062_p4 = pnand %p3060_p9, %p3465_p8  ;;  %p3069_p1 = por %p3068_p12, %p3067_p11 }
  0x69   : > { %p3063_p10 = pneg %p3062_p4 }
  0x6b   : > { %p3070_p3 = pnand %p3069_p1, %p3063_p10 }
  0x6d   : > { %3073 = shalt.err (!%p3070_p3)
}
  0x6e   : > { %2878 = dma.hbm_to_vmem [thread:$0]  (!%p3449_p6), %s3834_s7, 6144, %s386_s13, [#allocation18], %s3843_s29, %s3843_s29, %s3336_s12  }
  0x6f   : > { %s3074_s16 = scalar_lea.hbm %s3829_s2, 16 }
  0x70   : > { %p3075_p1 = scmp.ne.s32.totalorder %s3829_s2, %s3074_s16  ;;  %p3081_p0 = scmp.lt.u32.totalorder %s3074_s16, %s3829_s2 }
  0x72   : > { %p3077_p3 = pnand %p3075_p1, %p3465_p8 }
  0x74   : > { %p3078_p13 = pneg %p3077_p3 }
  0x76   : > { %p3083_p2 = pnand %p3081_p0, %p3078_p13 }
  0x78   : > { %3086 = shalt.err (!%p3083_p2)
}
  0x79   : > { %s3087_s23 = scalar_lea.vmem %s328_s15, 16  ;;  %s3094_s13 = scalar_lea.vmem %s328_s15, 32 }
  0x7a   : > { %p3088_p5 = scmp.ne.s32.totalorder %s328_s15, %s3087_s23  ;;  %p3095_p4 = scmp.lt.s32.totalorder %s328_s15, %s328_s15 }
  0x7b   : > { %p3096_p10 = scmp.lt.s32.totalorder %s3094_s13, %s3087_s23 }
  0x7c   : > { %p3090_p7 = pnand %p3088_p5, %p3465_p8 }
  0x7d   : > { %p3097_p11 = por %p3096_p10, %p3095_p4 }
  0x7e   : > { %p3091_p9 = pneg %p3090_p7 }
  0x80   : > { %p3098_p12 = pnand %p3097_p11, %p3091_p9 }
  0x82   : > { %3101 = shalt.err (!%p3098_p12)
}
  0x83   : > { %2863 = dma.hbm_to_vmem [thread:$0]  (!%p3449_p6), %s3829_s2, 16, %s328_s15, [#allocation9]  }
  0x84   : > { %s3339_s11 = smov [#allocation13]   ;;  %s3340_s14 = smov [#allocation16]  }
  0x85   : > { %s351_s25 = sshll.u32 %s3339_s11, 4  ;;  %s375_s16 = sshll.u32 %s3340_s14, 4  ;;  %s352_s25 = int_to_ptr.vmem [resolvable:$true] %s351_s25  ;;  %s376_s16 = int_to_ptr.vmem [resolvable:$true] %s375_s16 }
  0x86   : > { %s3102_s26 = scalar_lea.hbm %s3831_s4, 16 }
  0x87   : > { %p3103_p1 = scmp.ne.s32.totalorder %s3831_s4, %s3102_s26  ;;  %p3109_p0 = scmp.lt.u32.totalorder %s3102_s26, %s3831_s4 }
  0x89   : > { %p3105_p3 = pnand %p3103_p1, %p3465_p8 }
  0x8b   : > { %p3106_p13 = pneg %p3105_p3 }
  0x8d   : > { %p3111_p2 = pnand %p3109_p0, %p3106_p13 }
  0x8f   : > { %3114 = shalt.err (!%p3111_p2)
}
  0x90   : > { %s3115_s15 = scalar_lea.vmem %s352_s25, 16  ;;  %s3122_s1 = scalar_lea.vmem %s352_s25, 32 }
  0x91   : > { %p3116_p5 = scmp.ne.s32.totalorder %s352_s25, %s3115_s15  ;;  %p3123_p4 = scmp.lt.s32.totalorder %s352_s25, %s352_s25 }
  0x92   : > { %p3124_p10 = scmp.lt.s32.totalorder %s3122_s1, %s3115_s15 }
  0x93   : > { %p3118_p7 = pnand %p3116_p5, %p3465_p8 }
  0x94   : > { %p3125_p11 = por %p3124_p10, %p3123_p4 }
  0x95   : > { %p3119_p9 = pneg %p3118_p7 }
  0x97   : > { %p3126_p12 = pnand %p3125_p11, %p3119_p9 }
  0x99   : > { %3129 = shalt.err (!%p3126_p12)
}
  0x9a   : > { %2869 = dma.hbm_to_vmem [thread:$0]  (!%p3449_p6), %s3831_s4, 16, %s352_s25, [#allocation12]  }
  0x9b   : > { %s3130_s26 = scalar_lea.hbm %s3833_s6, 16 }
  0x9c   : > { %p3131_p1 = scmp.ne.s32.totalorder %s3833_s6, %s3130_s26  ;;  %p3137_p0 = scmp.lt.u32.totalorder %s3130_s26, %s3833_s6 }
  0x9e   : > { %p3133_p3 = pnand %p3131_p1, %p3465_p8 }
  0xa0   : > { %p3134_p13 = pneg %p3133_p3 }
  0xa2   : > { %p3139_p2 = pnand %p3137_p0, %p3134_p13 }
  0xa4   : > { %3142 = shalt.err (!%p3139_p2)
}
  0xa5   : > { %s3143_s15 = scalar_lea.vmem %s376_s16, 16  ;;  %s3150_s25 = scalar_lea.vmem %s376_s16, 32 }
  0xa6   : > { %p3144_p5 = scmp.ne.s32.totalorder %s376_s16, %s3143_s15  ;;  %p3151_p4 = scmp.lt.s32.totalorder %s376_s16, %s376_s16 }
  0xa7   : > { %p3152_p10 = scmp.lt.s32.totalorder %s3150_s25, %s3143_s15 }
  0xa8   : > { %p3146_p7 = pnand %p3144_p5, %p3465_p8 }
  0xa9   : > { %p3153_p11 = por %p3152_p10, %p3151_p4 }
  0xaa   : > { %p3147_p9 = pneg %p3146_p7 }
  0xac   : > { %p3154_p12 = pnand %p3153_p11, %p3147_p9 }
  0xae   : > { %3157 = shalt.err (!%p3154_p12)
}
  0xaf   : > { %2875 = dma.hbm_to_vmem [thread:$0]  (!%p3449_p6), %s3833_s6, 16, %s376_s16, [#allocation15]  }
  0xb0   : > { %s3341_s14 = smov [#allocation19]   ;;  %s3342_s10 = smov [#allocation20]  }
  0xb1   : > { %s399_s18 = sshll.u32 %s3341_s14, 4  ;;  %s410_s26 = sshll.u32 %s3342_s10, 4  ;;  %s400_s18 = int_to_ptr.vmem [resolvable:$true] %s399_s18  ;;  %s411_s26 = int_to_ptr.vmem [resolvable:$true] %s410_s26 }
  0xb2   : > { %s3158_s13 = scalar_lea.hbm %s3835_s8, 16 }
  0xb3   : > { %p3159_p1 = scmp.ne.s32.totalorder %s3835_s8, %s3158_s13  ;;  %p3165_p0 = scmp.lt.u32.totalorder %s3158_s13, %s3835_s8 }
  0xb5   : > { %p3161_p3 = pnand %p3159_p1, %p3465_p8 }
  0xb7   : > { %p3162_p13 = pneg %p3161_p3 }
  0xb9   : > { %p3167_p2 = pnand %p3165_p0, %p3162_p13 }
  0xbb   : > { %3170 = shalt.err (!%p3167_p2)
}
  0xbc   : > { %s3171_s16 = scalar_lea.vmem %s400_s18, 16  ;;  %s3178_s11 = scalar_lea.vmem %s400_s18, 32 }
  0xbd   : > { %p3172_p5 = scmp.ne.s32.totalorder %s400_s18, %s3171_s16  ;;  %p3179_p4 = scmp.lt.s32.totalorder %s400_s18, %s400_s18 }
  0xbe   : > { %p3180_p10 = scmp.lt.s32.totalorder %s3178_s11, %s3171_s16 }
  0xbf   : > { %p3174_p7 = pnand %p3172_p5, %p3465_p8 }
  0xc0   : > { %p3181_p11 = por %p3180_p10, %p3179_p4 }
  0xc1   : > { %p3175_p9 = pneg %p3174_p7 }
  0xc3   : > { %p3182_p12 = pnand %p3181_p11, %p3175_p9 }
  0xc5   : > { %3185 = shalt.err (!%p3182_p12)
}
  0xc6   : > { %2881 = dma.hbm_to_vmem [thread:$0]  (!%p3449_p6), %s3835_s8, 16, %s400_s18, [#allocation18]  }
  0xc7   : > { %s3186_s13 = scalar_lea.hbm %s3836_s9, 16 }
  0xc8   : > { %p3187_p1 = scmp.ne.s32.totalorder %s3836_s9, %s3186_s13  ;;  %p3193_p0 = scmp.lt.u32.totalorder %s3186_s13, %s3836_s9 }
  0xca   : > { %p3189_p3 = pnand %p3187_p1, %p3465_p8 }
  0xcc   : > { %p3190_p13 = pneg %p3189_p3 }
  0xce   : > { %p3195_p2 = pnand %p3193_p0, %p3190_p13 }
  0xd0   : > { %3198 = shalt.err (!%p3195_p2)
}
  0xd1   : > { %s3199_s16 = scalar_lea.vmem %s411_s26, 16  ;;  %s3206_s18 = scalar_lea.vmem %s411_s26, 32 }
  0xd2   : > { %p3200_p5 = scmp.ne.s32.totalorder %s411_s26, %s3199_s16  ;;  %p3207_p4 = scmp.lt.s32.totalorder %s411_s26, %s411_s26 }
  0xd3   : > { %p3208_p10 = scmp.lt.s32.totalorder %s3206_s18, %s3199_s16 }
  0xd4   : > { %p3202_p7 = pnand %p3200_p5, %p3465_p8 }
  0xd5   : > { %p3209_p11 = por %p3208_p10, %p3207_p4 }
  0xd6   : > { %p3203_p9 = pneg %p3202_p7 }
  0xd8   : > { %p3210_p12 = pnand %p3209_p11, %p3203_p9 }
  0xda   : > { %3213 = shalt.err (!%p3210_p12)
}
  0xdb   : > { %2884 = dma.hbm_to_vmem [thread:$0]  (!%p3449_p6), %s3836_s9, 16, %s411_s26, [#allocation21]  }
  0xdc   : > { %s2006_s17 = sadd.s32 4294967294, %s3330_s22   ;;  %s3654_s28 = sadd.s32 1, %s3330_s22  }
  0xdd   : > { %s41_s10 = sadd.s32 1, %s3326_s21  ;;  %s38_s27 = ssub.s32 %s3330_s22, %s3654_s28 }
  0xde   : > { %p48_p8 = scmp.ne.s32.totalorder %s3326_s21, %s3322_s20  ;;  %p39_p1 = scmp.eq.s32.totalorder %s38_s27, 0 }
  0xdf   : > { %p49_p3 = scmp.eq.s32.totalorder %s3330_s22, 0  ;;  %p54_p13 = scmp.ne.s32.totalorder %s3322_s20, %s3318_s19 }
  0xe0   : > { %p288_p0 = scmp.eq.s32.totalorder %s3433_s24, 1  ;;  %p3852_p5 = scmp.eq.s32.totalorder %s3433_s24, 0 }
  0xe1   : > { %s3666_s23 = scalar_select %p39_p1, %s3326_s21, %s41_s10  }
  0xe2   : > { %p50_p2 = por %p49_p3, %p48_p8  ;;  %p3670_p7 = por %p3852_p5, %p54_p13 }
  0xe3   : > { %p3674_p6 = por %p288_p0, %p48_p8  ;;  %p294_p9 = scmp.eq.s32.totalorder %s2006_s17, 1 }
  0xe4   : > { %p2902_p4 = scmp.lt.s32.totalorder %s3330_s22, 2  ;;  %s424_s30 = sand.u32 1, %s3326_s21  }
  0xe5   : > { %s3854_s26 = scalar_select %p3674_p6, 1, 0 }
  0xe6   : > { %p3680_p10 = por %p294_p9, %p54_p13  ;;  %s2018_s25 = sshll.u32 %s424_s30, 4 }
  0xe7   : > { %s2042_s1 = sshll.u32 %s3330_s22, 8  ;;  %s428_s14 = scalar_lea.vmem [#allocation5], %s2018_s25 }
  0xe8   : > { %s3855_s15 = scalar_select %p3680_p10, 1, 0 }
  0xe9   : > { %s3688_s11 = scalar_lea.hbm %s3827_s0, %s2042_s1  ;;  %s435_s10 = sshll.u32 %s428_s14, 4  ;;  %s3694_s10 = int_to_ptr.vmem [resolvable:$true] %s435_s10 }
  0xea   : > { %p3690_p11 = pnand %p2902_p4, %p50_p2  ;;  %s3696_s27 = scalar_lea.sflag [#allocation6], %s424_s30 }
  0xeb   : > { %s3214_s29 = scalar_lea.hbm %s3688_s11, 256  ;;  %s3219_s16 = scalar_lea.hbm %s3827_s0, 512 }
  0xec   : > { %p3215_p12 = scmp.ne.s32.totalorder %s3688_s11, %s3214_s29  ;;  %p3216_p8 = pneg %p3690_p11 }
  0xed   : > { %p3220_p13 = scmp.lt.u32.totalorder %s3688_s11, %s3827_s0  ;;  %p3221_p0 = scmp.lt.u32.totalorder %s3219_s16, %s3214_s29 }
  0xee   : > { %p3217_p1 = pnand %p3216_p8, %p3215_p12  ;;  %p3223_p5 = scmp.lt.u32.totalorder %s3214_s29, %s3688_s11 }
  0xef   : > { %p3222_p2 = por %p3221_p0, %p3220_p13 }
  0xf0   : > { %p3218_p3 = pneg %p3217_p1 }
  0xf1   : > { %p3224_p9 = por %p3223_p5, %p3222_p2 }
  0xf3   : > { %p3225_p4 = pnand %p3224_p9, %p3218_p3 }
  0xf5   : > { %3228 = shalt.err (!%p3225_p4)
}
  0xf6   : > { %s3229_s30 = scalar_lea.vmem %s3694_s10, 256  ;;  %s3343_s25 = smov [#allocation5]  }
  0xf7   : > { %p3230_p12 = scmp.ne.s32.totalorder %s3694_s10, %s3229_s30  ;;  %s3234_s1 = sshll.u32 %s3343_s25, 4  ;;  %s3235_s1 = int_to_ptr.vmem [resolvable:$false] %s3234_s1 }
  0xf8   : > { %s3236_s18 = scalar_lea.vmem %s3235_s1, 512  ;;  %p3237_p6 = scmp.lt.s32.totalorder %s3694_s10, %s3235_s1 }
  0xf9   : > { %p3232_p1 = pnand %p3230_p12, %p3216_p8  ;;  %p3238_p13 = scmp.lt.s32.totalorder %s3236_s18, %s3229_s30 }
  0xfb   : > { %p3233_p10 = pneg %p3232_p1  ;;  %p3239_p0 = por %p3238_p13, %p3237_p6 }
  0xfd   : > { %p3240_p2 = pnand %p3239_p0, %p3233_p10 }
  0xff   : > { %3243 = shalt.err (!%p3240_p2)
}
 0x100   : > { %s3857_s29 = smov 128   ;;  %s3858_s16 = sld [smem:[#allocation30_spill]] }
 0x101   : > { %2888 = dma.hbm_to_vmem [thread:$0]  (!%p3690_p11), %s3688_s11, 256, %s3694_s10, %s3696_s27, %s3857_s29, %s3857_s29, %s3336_s12  }
 0x106   : > { %p3859_p8 = scmp.ne.s32.totalorder %s3858_s16, 0 }
 0x107   : > { %s3730_s14 = sand.u32 (!%p3859_p8), 1, %s3322_s20  }
 0x108   : > { %447 = sbr.rel (%p3859_p8) target bundleno = 1648 (0x670), region = 64  ;;  %s2022_s30 = sshll.u32 (!%p3859_p8), %s3730_s14, 4 }
 0x109   : > { %s450_s25 = scalar_lea.sflag (!%p3859_p8), [#allocation6], %s3730_s14  ;;  %s453_s1 = scalar_lea.vmem (!%p3859_p8), [#allocation5], %s2022_s30 }
 0x10f   : > { %3289 = dma.done.wait (%p3670_p7), %s450_s25, 256  }
 0x110   : > { %3291 = vsyncadd (%p3670_p7), %s450_s25, 4294967040  ;;  %p3860_p6 = scmp.eq.s32.totalorder %s3433_s24, 0 }
 0x112   : > { %3293 = dma.done.wait (%p3860_p6), [#allocation9], 10256   ;;  %p3861_p10 = pmov %p3860_p6 }
 0x113   : > { %p3862_p11 = pmov %p3860_p6 }
 0x114   : > { %3295 = vsyncadd (%p3861_p10), [#allocation9], 4294957040 }
 0x115   : > { %3297 = dma.done.wait (%p3862_p11), [#allocation12], 10256   ;;  %p3863_p3 = pmov %p3860_p6 }
 0x117   : > { %3299 = vsyncadd (%p3863_p3), [#allocation12], 4294957040  ;;  %p3864_p5 = pmov %p3863_p3 }
 0x118   : > { %p3865_p9 = pmov %p3863_p3 }
 0x119   : > { %3301 = dma.done.wait (%p3864_p5), [#allocation15], 6160  }
 0x11a   : > { %3303 = vsyncadd (%p3865_p9), [#allocation15], 4294961136  ;;  %p3866_p7 = pmov %p3863_p3 }
 0x11b   : > { %p3867_p4 = pmov %p3863_p3 }
 0x11c   : > { %3305 = dma.done.wait (%p3866_p7), [#allocation18], 6160  }
 0x11d   : > { %3307 = vsyncadd (%p3867_p4), [#allocation18], 4294961136  ;;  %p3868_p12 = pmov %p3863_p3 }
 0x11e   : > { %p3869_p1 = pmov %p3863_p3 }
 0x11f   : > { %3309 = dma.done.wait (%p3868_p12), [#allocation21], 16  }
 0x120   : > { %3311 = vsyncadd (%p3869_p1), [#allocation21], 4294967280  ;;  %v3344_v1 = vmov 0.0   ;;  %v530_v2 = vld [vmem:[%s453_s1] sm:$0xff]  ;;  %v531_v3 = vld [vmem:[%s453_s1 + $0x8] sm:$0xff]  ;;  %vm564_vm0 = vcmask 130048  }
 0x121   : > { %527 = vst [vmem:[#allocation2] sm:$0xff] %v3344_v1  ;;  %528 = vst [vmem:[#allocation2 + $0x8] sm:$0xff] %v3344_v1  ;;  %v621_v4 = vld [vmem:[#allocation8 + $0x80] sm:$0xff]  ;;  %532 = vxpose.xlu0.b32.start [1/2] (short) (narrow) %v530_v2, 16  ;;  %v622_v5 = vld [vmem:[#allocation8 + $0x88] sm:$0xff]  ;;  %vm567_vm1 = vcmask 123905  }
 0x122   : > { %529 = vst [vmem:[#allocation2 + $0x10] sm:$0xf] %v3344_v1  ;;  %v605_v6 = vld [vmem:[#allocation8] sm:$0xff]  ;;  %v606_v7 = vld [vmem:[#allocation8 + $0x8] sm:$0xff]  ;;  %v2493_v8 = vpack.c.bf16 %v622_v5, %v621_v4  ;;  %v623_v10 = vld [vmem:[#allocation8 + $0x90] sm:$0xff]  ;;  %vm571_vm2 = vcmask 124930  }
 0x123   : > { %v2495_v9 = vpack.c.bf16 %v606_v7, %v605_v6  ;;  %v624_v11 = vld [vmem:[#allocation8 + $0x98] sm:$0xff]  ;;  %v607_v12 = vld [vmem:[#allocation8 + $0x10] sm:$0xff]  ;;  %v653_v15 = vld [vmem:[#allocation8 + $0x180] sm:$0xff]  ;;  %vm569_vm3 = vcmask 129030   ;;  %vm573_vm4 = vcmask 128005   ;;  %vm923_vm5 = vcmask 261120  }
 0x124   : > { %v2497_v13 = vpack.c.bf16 %v624_v11, %v623_v10  ;;  %v608_v14 = vld [vmem:[#allocation8 + $0x18] sm:$0xff]  ;;  %v654_v16 = vld [vmem:[#allocation8 + $0x188] sm:$0xff]  ;;  %2494 = vmatprep.subr.bf16.mxu0 %v2493_v8  ;;  %v637_v18 = vld [vmem:[#allocation8 + $0x100] sm:$0xff]  ;;  %vm928_vm7 = vcmask 260102   ;;  %vm932_vm8 = vcmask 259077   ;;  %vm926_vm10 = vcmask 254977  }
 0x125   : > { %v2525_v17 = vpack.c.bf16 %v654_v16, %v653_v15  ;;  %v638_v19 = vld [vmem:[#allocation8 + $0x108] sm:$0xff]  ;;  %v625_v20 = vld [vmem:[#allocation8 + $0xa0] sm:$0xff]  ;;  %533 = vxpose.xlu0.b32.end [2/2] (short) (narrow) %v531_v3, 16  ;;  %2496 = vmatpush3.bf16.msra.mxu0 %v2495_v9  ;;  %v2499_v21 = vpack.c.bf16 %v608_v14, %v607_v12  ;;  %v655_v27 = vld [vmem:[#allocation8 + $0x190] sm:$0xff]  ;;  %vm930_vm11 = vcmask 256002   ;;  %s2039_s12 = sshll.u32 %s3433_s24, 4 }
 0x126   : > { %v2527_v22 = vpack.c.bf16 %v638_v19, %v637_v18  ;;  %v626_v23 = vld [vmem:[#allocation8 + $0xa8] sm:$0xff]  ;;  %v609_v24 = vld [vmem:[#allocation8 + $0x20] sm:$0xff]  ;;  %2498 = vmatprep.subr.bf16.mxu0 %v2497_v13  ;;  %v656_v28 = vld [vmem:[#allocation8 + $0x198] sm:$0xff]  ;;  %s526_s13 = scalar_lea.vmem [#allocation22], %s3730_s14  ;;  %s3870_s27 = sld [smem:[#allocation32_spill]] }
 0x127   : > { %v610_v25 = vld [vmem:[#allocation8 + $0x28] sm:$0xff]  ;;  %2526 = vmatprep.subr.bf16.mxu1 %v2525_v17  ;;  %v2501_v26 = vpack.c.bf16 %v626_v23, %v625_v20  ;;  %v639_v29 = vld [vmem:[#allocation8 + $0x110] sm:$0xff]  ;;  %v2529_v30 = vpack.c.bf16 %v656_v28, %v655_v27  ;;  %v640_v31 = vld [vmem:[#allocation8 + $0x118] sm:$0xff]  ;;  %s1854_s11 = sshll.u32 %s526_s13, 4  ;;  %s1842_s29 = scalar_lea.sflag [#allocation7], %s3730_s14  ;;  %s3785_s11 = int_to_ptr.vmem [resolvable:$true] %s1854_s11 }
 0x128   : > { %2528 = vmatpush3.bf16.msra.mxu1 %v2527_v22  ;;  %v627_v32 = vld [vmem:[#allocation8 + $0xb0] sm:$0xff]  ;;  %v628_v33 = vld [vmem:[#allocation8 + $0xb8] sm:$0xff]  ;;  %v2531_v34 = vpack.c.bf16 %v640_v31, %v639_v29  ;;  %v657_v35 = vld [vmem:[#allocation8 + $0x1a0] sm:$0xff]  ;;  %v2503_v36 = vpack.c.bf16 %v610_v25, %v609_v24  ;;  %s3244_s16 = scalar_lea.vmem %s3785_s11, 16  ;;  %p3871_p0 = scmp.ne.s32.totalorder %s3854_s26, 0 }
 0x129   : > { %2500 = vmatpush3.bf16.msra.mxu0 %v2499_v21  ;;  %2530 = vmatprep.subr.bf16.mxu1 %v2529_v30  ;;  %v658_v37 = vld [vmem:[#allocation8 + $0x1a8] sm:$0xff]  ;;  %v641_v38 = vld [vmem:[#allocation8 + $0x120] sm:$0xff]  ;;  %v2505_v40 = vpack.c.bf16 %v628_v33, %v627_v32  ;;  %v611_v41 = vld [vmem:[#allocation8 + $0x30] sm:$0xff]  ;;  %p3245_p13 = scmp.ne.s32.totalorder %s3785_s11, %s3244_s16  ;;  %s3348_s24 = smov [#allocation22]  }
 0x12a   : > { %v642_v39 = vld [vmem:[#allocation8 + $0x128] sm:$0xff]  ;;  %2502 = vmatprep.subr.bf16.mxu0 %v2501_v26  ;;  %v612_v42 = vld [vmem:[#allocation8 + $0x38] sm:$0xff]  ;;  %v2533_v43 = vpack.c.bf16 %v658_v37, %v657_v35  ;;  %v629_v44 = vld [vmem:[#allocation8 + $0xc0] sm:$0xff]  ;;  %s3248_s30 = sshll.u32 %s3348_s24, 4  ;;  %s3249_s30 = int_to_ptr.vmem [resolvable:$false] %s3248_s30 }
 0x12b   : > { %v2535_v45 = vpack.c.bf16 %v642_v39, %v641_v38  ;;  %v630_v46 = vld [vmem:[#allocation8 + $0xc8] sm:$0xff]  ;;  %v659_v47 = vld [vmem:[#allocation8 + $0x1b0] sm:$0xff]  ;;  %v660_v48 = vld [vmem:[#allocation8 + $0x1b8] sm:$0xff]  ;;  %v2507_v52 = vpack.c.bf16 %v612_v42, %v611_v41  ;;  %p3246_p2 = pnand %p3245_p13, %p3871_p0  ;;  %s3250_s25 = scalar_lea.vmem %s3249_s30, 32 }
 0x12c   : > { %2532 = vmatpush3.bf16.msra.mxu1 %v2531_v34  ;;  %v2537_v49 = vpack.c.bf16 %v660_v48, %v659_v47  ;;  %v643_v50 = vld [vmem:[#allocation8 + $0x130] sm:$0xff]  ;;  %v644_v51 = vld [vmem:[#allocation8 + $0x138] sm:$0xff]  ;;  %v613_v53 = vld [vmem:[#allocation8 + $0x40] sm:$0xff]  ;;  %v2509_v54 = vpack.c.bf16 %v630_v46, %v629_v44  ;;  %s3783_s18 = scalar_lea.hbm %s3870_s27, %s2039_s12  ;;  %p3251_p6 = scmp.lt.s32.totalorder %s3785_s11, %s3249_s30 }
 0x12d   : > { %2534 = vmatprep.subr.bf16.mxu1 %v2533_v43  ;;  %2504 = vmatpush3.bf16.msra.mxu0 %v2503_v36  ;;  %v614_v55 = vld [vmem:[#allocation8 + $0x48] sm:$0xff]  ;;  %v661_v56 = vld [vmem:[#allocation8 + $0x1c0] sm:$0xff]  ;;  %v2539_v58 = vpack.c.bf16 %v644_v51, %v643_v50  ;;  %v631_v59 = vld [vmem:[#allocation8 + $0xd0] sm:$0xff]  ;;  %p3247_p8 = pneg %p3246_p2  ;;  %p3252_p10 = scmp.lt.s32.totalorder %s3250_s25, %s3244_s16 }
 0x12e   : > { %2506 = vmatprep.subr.bf16.mxu0 %v2505_v40  ;;  %v662_v57 = vld [vmem:[#allocation8 + $0x1c8] sm:$0xff]  ;;  %v632_v60 = vld [vmem:[#allocation8 + $0xd8] sm:$0xff]  ;;  %v645_v62 = vld [vmem:[#allocation8 + $0x140] sm:$0xff]  ;;  %v2511_v0 = vpack.c.bf16 %v614_v55, %v613_v53 }
 0x12f   : > { %v2541_v61 = vpack.c.bf16 %v662_v57, %v661_v56  ;;  %v646_v63 = vld [vmem:[#allocation8 + $0x148] sm:$0xff]  ;;  %v663_v2 = vld [vmem:[#allocation8 + $0x1d0] sm:$0xff]  ;;  %v664_v3 = vld [vmem:[#allocation8 + $0x1d8] sm:$0xff]  ;;  %v2513_v4 = vpack.c.bf16 %v632_v60, %v631_v59  ;;  %p3253_p11 = por %p3252_p10, %p3251_p6 }
 0x130   : > { %2536 = vmatpush3.bf16.msra.mxu1 %v2535_v45  ;;  %v615_v5 = vld [vmem:[#allocation8 + $0x50] sm:$0xff]  ;;  %v616_v6 = vld [vmem:[#allocation8 + $0x58] sm:$0xff]  ;;  %v2543_v7 = vpack.c.bf16 %v646_v63, %v645_v62  ;;  %v633_v8 = vld [vmem:[#allocation8 + $0xe0] sm:$0xff]  ;;  %v2545_v10 = vpack.c.bf16 %v664_v3, %v663_v2 }
 0x131   : > { %2538 = vmatprep.subr.bf16.mxu1 %v2537_v49  ;;  %2508 = vmatpush3.bf16.msra.mxu0 %v2507_v52  ;;  %v634_v9 = vld [vmem:[#allocation8 + $0xe8] sm:$0xff]  ;;  %v647_v11 = vld [vmem:[#allocation8 + $0x150] sm:$0xff]  ;;  %v648_v12 = vld [vmem:[#allocation8 + $0x158] sm:$0xff]  ;;  %v2515_v13 = vpack.c.bf16 %v616_v6, %v615_v5  ;;  %p3254_p3 = pnand %p3253_p11, %p3247_p8 }
 0x132   : > { %2510 = vmatprep.subr.bf16.mxu0 %v2509_v54  ;;  %v665_v14 = vld [vmem:[#allocation8 + $0x1e0] sm:$0xff]  ;;  %v666_v15 = vld [vmem:[#allocation8 + $0x1e8] sm:$0xff]  ;;  %v2517_v16 = vpack.c.bf16 %v634_v9, %v633_v8  ;;  %v2547_v19 = vpack.c.bf16 %v648_v12, %v647_v11  ;;  %v635_v20 = vld [vmem:[#allocation8 + $0xf0] sm:$0xff] }
 0x133   : > { %v617_v17 = vld [vmem:[#allocation8 + $0x60] sm:$0xff]  ;;  %v618_v18 = vld [vmem:[#allocation8 + $0x68] sm:$0xff]  ;;  %v636_v21 = vld [vmem:[#allocation8 + $0xf8] sm:$0xff]  ;;  %v2549_v22 = vpack.c.bf16 %v666_v15, %v665_v14 }
 0x134   : > { %2540 = vmatpush3.bf16.msra.mxu1 %v2539_v58  ;;  %v649_v23 = vld [vmem:[#allocation8 + $0x160] sm:$0xff]  ;;  %v650_v24 = vld [vmem:[#allocation8 + $0x168] sm:$0xff]  ;;  %v2519_v25 = vpack.c.bf16 %v618_v18, %v617_v17  ;;  %v667_v26 = vld [vmem:[#allocation8 + $0x1f0] sm:$0xff]  ;;  %v2521_v28 = vpack.c.bf16 %v636_v21, %v635_v20 }
 0x135   : > { %2542 = vmatprep.subr.bf16.mxu1 %v2541_v61  ;;  %2512 = vmatpush3.bf16.msra.mxu0 %v2511_v0  ;;  %v668_v27 = vld [vmem:[#allocation8 + $0x1f8] sm:$0xff]  ;;  %v619_v29 = vld [vmem:[#allocation8 + $0x70] sm:$0xff]  ;;  %v2551_v31 = vpack.c.bf16 %v650_v24, %v649_v23  ;;  %v669_v32 = vld [vmem:[#allocation8 + $0x200] sm:$0xff] }
 0x136   : > { %2514 = vmatprep.subr.bf16.mxu0 %v2513_v4  ;;  %v620_v30 = vld [vmem:[#allocation8 + $0x78] sm:$0xff]  ;;  %v670_v33 = vld [vmem:[#allocation8 + $0x208] sm:$0xff]  ;;  %v2553_v34 = vpack.c.bf16 %v668_v27, %v667_v26  ;;  %v651_v35 = vld [vmem:[#allocation8 + $0x170] sm:$0xff] }
 0x137   : > { %v652_v36 = vld [vmem:[#allocation8 + $0x178] sm:$0xff]  ;;  %v2523_v37 = vpack.c.bf16 %v620_v30, %v619_v29  ;;  %v2557_v38 = vpack.c.bf16 %v670_v33, %v669_v32  ;;  %v671_v42 = vld [vmem:[#allocation8 + $0x210] sm:$0xff]  ;;  %v673_v47 = vld [vmem:[#allocation8 + $0x220] sm:$0xff] }
 0x138   : > { %2544 = vmatpush3.bf16.msra.mxu1 %v2543_v7  ;;  %v2555_v39 = vpack.c.bf16 %v652_v36, %v651_v35  ;;  %v672_v43 = vld [vmem:[#allocation8 + $0x218] sm:$0xff]  ;;  %v674_v48 = vld [vmem:[#allocation8 + $0x228] sm:$0xff]  ;;  %v675_v49 = vld [vmem:[#allocation8 + $0x230] sm:$0xff] }
 0x139   : > { %2546 = vmatprep.subr.bf16.mxu1 %v2545_v10  ;;  %2516 = vmatpush3.bf16.msra.mxu0 %v2515_v13  ;;  %v2561_v46 = vpack.c.bf16 %v672_v43, %v671_v42  ;;  %v2565_v53 = vpack.c.bf16 %v674_v48, %v673_v47  ;;  %v676_v56 = vld [vmem:[#allocation8 + $0x238] sm:$0xff]  ;;  %v677_v60 = vld [vmem:[#allocation8 + $0x240] sm:$0xff]  ;;  %v678_v61 = vld [vmem:[#allocation8 + $0x248] sm:$0xff] }
 0x13a   : > { %2518 = vmatprep.subr.bf16.mxu0 %v2517_v16  ;;  %v2569_v59 = vpack.c.bf16 %v676_v56, %v675_v49  ;;  %v2573_v62 = vpack.c.bf16 %v678_v61, %v677_v60  ;;  %v679_v63 = vld [vmem:[#allocation8 + $0x250] sm:$0xff]  ;;  %v680_v0 = vld [vmem:[#allocation8 + $0x258] sm:$0xff]  ;;  %v681_v3 = vld [vmem:[#allocation8 + $0x260] sm:$0xff] }
 0x13b   : > { %v2577_v2 = vpack.c.bf16 %v680_v0, %v679_v63  ;;  %v682_v4 = vld [vmem:[#allocation8 + $0x268] sm:$0xff]  ;;  %v683_v6 = vld [vmem:[#allocation8 + $0x270] sm:$0xff]  ;;  %v684_v7 = vld [vmem:[#allocation8 + $0x278] sm:$0xff] }
 0x13c   : > { %2548 = vmatpush3.bf16.msra.mxu1 %v2547_v19  ;;  %v2581_v5 = vpack.c.bf16 %v682_v4, %v681_v3  ;;  %v2585_v8 = vpack.c.bf16 %v684_v7, %v683_v6  ;;  %v980_v10 = vld [vmem:[#allocation11 + $0x80] sm:$0xff]  ;;  %v981_v11 = vld [vmem:[#allocation11 + $0x88] sm:$0xff]  ;;  %v982_v21 = vld [vmem:[#allocation11 + $0x90] sm:$0xff] }
 0x13d   : > { %2550 = vmatprep.subr.bf16.mxu1 %v2549_v22  ;;  %2520 = vmatpush3.bf16.msra.mxu0 %v2519_v25  ;;  %v964_v12 = vld [vmem:[#allocation11] sm:$0xff]  ;;  %v2589_v13 = vpack.c.bf16 %v981_v11, %v980_v10  ;;  %v965_v14 = vld [vmem:[#allocation11 + $0x8] sm:$0xff]  ;;  %v983_v23 = vld [vmem:[#allocation11 + $0x98] sm:$0xff] }
 0x13e   : > { %2522 = vmatprep.subr.bf16.mxu0 %v2521_v28  ;;  %v1012_v15 = vld [vmem:[#allocation11 + $0x180] sm:$0xff]  ;;  %v1013_v16 = vld [vmem:[#allocation11 + $0x188] sm:$0xff]  ;;  %v2591_v17 = vpack.c.bf16 %v965_v14, %v964_v12  ;;  %v966_v24 = vld [vmem:[#allocation11 + $0x10] sm:$0xff]  ;;  %v2593_v26 = vpack.c.bf16 %v983_v23, %v982_v21 }
 0x13f   : > { %v2621_v18 = vpack.c.bf16 %v1013_v16, %v1012_v15  ;;  %v996_v19 = vld [vmem:[#allocation11 + $0x100] sm:$0xff]  ;;  %v997_v20 = vld [vmem:[#allocation11 + $0x108] sm:$0xff]  ;;  %v967_v25 = vld [vmem:[#allocation11 + $0x18] sm:$0xff] }
 0x140   : > { %2552 = vmatpush3.bf16.msra.mxu1 %v2551_v31  ;;  %v2623_v22 = vpack.c.bf16 %v997_v20, %v996_v19  ;;  %v2595_v27 = vpack.c.bf16 %v967_v25, %v966_v24  ;;  %v1014_v28 = vld [vmem:[#allocation11 + $0x190] sm:$0xff]  ;;  %v1015_v29 = vld [vmem:[#allocation11 + $0x198] sm:$0xff]  ;;  %v984_v33 = vld [vmem:[#allocation11 + $0xa0] sm:$0xff] }
 0x141   : > { %2554 = vmatprep.subr.bf16.mxu1 %v2553_v34  ;;  %2524 = vmatpush3.bf16.msra.mxu0 %v2523_v37  ;;  %v998_v30 = vld [vmem:[#allocation11 + $0x110] sm:$0xff]  ;;  %v2625_v31 = vpack.c.bf16 %v1015_v29, %v1014_v28  ;;  %v999_v32 = vld [vmem:[#allocation11 + $0x118] sm:$0xff]  ;;  %v985_v34 = vld [vmem:[#allocation11 + $0xa8] sm:$0xff] }
 0x142   : > { %2558 = vmatprep.subr.bf16.mxu0 %v2557_v38  ;;  %v2627_v35 = vpack.c.bf16 %v999_v32, %v998_v30  ;;  %v2597_v36 = vpack.c.bf16 %v985_v34, %v984_v33  ;;  %v968_v37 = vld [vmem:[#allocation11 + $0x20] sm:$0xff]  ;;  %v1001_v42 = vld [vmem:[#allocation11 + $0x128] sm:$0xff]  ;;  %v970_v47 = vld [vmem:[#allocation11 + $0x30] sm:$0xff] }
 0x143   : > { %v988_v56 = vld [vmem:[#allocation11 + $0xc0] sm:$0xff]  ;;  %v1005_v4 = vld [vmem:[#allocation11 + $0x148] sm:$0xff]  ;;  %v990_v7 = vld [vmem:[#allocation11 + $0xd0] sm:$0xff] }
 0x144   : > { %2556 = vmatpush3.bf16.msra.mxu1 %v2555_v39  ;;  %v1016_v39 = vld [vmem:[#allocation11 + $0x1a0] sm:$0xff]  ;;  %v974_v10 = vld [vmem:[#allocation11 + $0x50] sm:$0xff]  ;;  %v975_v11 = vld [vmem:[#allocation11 + $0x58] sm:$0xff] }
 0x145   : > { %2590 = vmatprep.subr.bf16.mxu1 %v2589_v13  ;;  %v972_v61 = vld [vmem:[#allocation11 + $0x40] sm:$0xff]  ;;  %v1022_v12 = vld [vmem:[#allocation11 + $0x1d0] sm:$0xff]  ;;  %v2611_v13 = vpack.c.bf16 %v975_v11, %v974_v10  ;;  %v1023_v14 = vld [vmem:[#allocation11 + $0x1d8] sm:$0xff] }
 0x146   : > { %v1020_v63 = vld [vmem:[#allocation11 + $0x1c0] sm:$0xff]  ;;  %v1006_v15 = vld [vmem:[#allocation11 + $0x150] sm:$0xff]  ;;  %v1007_v16 = vld [vmem:[#allocation11 + $0x158] sm:$0xff] }
 0x147   : > { %v1004_v3 = vld [vmem:[#allocation11 + $0x140] sm:$0xff]  ;;  %v993_v20 = vld [vmem:[#allocation11 + $0xe8] sm:$0xff]  ;;  %v995_v32 = vld [vmem:[#allocation11 + $0xf8] sm:$0xff] }
 0x148   : > { %v2639_v6 = vpack.c.bf16 %v1005_v4, %v1004_v3  ;;  %v992_v19 = vld [vmem:[#allocation11 + $0xe0] sm:$0xff]  ;;  %v977_v23 = vld [vmem:[#allocation11 + $0x68] sm:$0xff]  ;;  %v978_v33 = vld [vmem:[#allocation11 + $0x70] sm:$0xff] }
 0x149   : > { %v2613_v21 = vpack.c.bf16 %v993_v20, %v992_v19  ;;  %v1024_v24 = vld [vmem:[#allocation11 + $0x1e0] sm:$0xff]  ;;  %v1009_v28 = vld [vmem:[#allocation11 + $0x168] sm:$0xff]  ;;  %v1034_v20 = vld [vmem:[#allocation11 + $0x230] sm:$0xff] }
 0x1a1   : > { %v548_v40 = vpop.trf.xlu0 }
 0x1a2   : > { %565 = vst.msk [vmem:[#allocation2 + $0x2] sm:$0xff] %vm564_vm0, %v548_v40 }
 0x1a3   : > { %568 = vst.msk [vmem:[#allocation2] sm:$0x2] %vm567_vm1, %v548_v40 }
 0x1a4   : > { %572 = vst.msk [vmem:[#allocation2 - $0x2] sm:$0x4] %vm571_vm2, %v548_v40  ;;  %v1017_v40 = vld [vmem:[#allocation11 + $0x1a8] sm:$0xff]  ;;  %vm1759_vm2 = vcmask 64512  }
 0x1a5   : > { %v549_v41 = vpop.trf.xlu0 }
 0x1a6   : > { %566 = vst.msk [vmem:[#allocation2 + $0xa] sm:$0xff] %vm564_vm0, %v549_v41 }
 0x1a7   : > { %570 = vst.msk [vmem:[#allocation2 + $0xc] sm:$0x40] %vm569_vm3, %v549_v41 }
 0x1a8   : > { %574 = vst.msk [vmem:[#allocation2 + $0xe] sm:$0x20] %vm573_vm4, %v549_v41  ;;  %v1000_v41 = vld [vmem:[#allocation11 + $0x120] sm:$0xff]  ;;  %vm2815_vm4 = vmpackc.low %vm1759_vm2, %vm1759_vm2 }
 0x1a9   : > { %v583_v54 = vld [vmem:[#allocation2 + $0x2] sm:$0xff]  ;;  %v2631_v48 = vpack.c.bf16 %v1001_v42, %v1000_v41  ;;  %v1011_v41 = vld [vmem:[#allocation11 + $0x178] sm:$0xff] }
 0x1aa   : > { %v579_v44 = vld [vmem:[#allocation2 + $0x1] sm:$0xff] }
 0x1ab   : > { %v575_v45 = vld [vmem:[#allocation2] sm:$0xff]  ;;  %756 = vmatprep.mubr.f32.mxu0 %v579_v44  ;;  %v2629_v44 = vpack.c.bf16 %v1017_v40, %v1016_v39  ;;  %v1010_v40 = vld [vmem:[#allocation11 + $0x170] sm:$0xff] }
 0x1ac   : > { %757 = vmatmul.mubr.f32.vlgmr.msra.gmra.mrb[0].mxu0 %v575_v45  ;;  %v986_v45 = vld [vmem:[#allocation11 + $0xb0] sm:$0xff]  ;;  %v2651_v42 = vpack.c.bf16 %v1011_v41, %v1010_v40  ;;  %v1336_v41 = vld [vmem:[#allocation14 + $0x100] sm:$0xff] }
 0x1ad   : > { %2560 = vmatpush3.bf16.msra.mxu0 %v2557_v38  ;;  %v580_v50 = vld [vmem:[#allocation2 + $0x9] sm:$0xff] }
 0x1ae   : > { %v587_v51 = vld [vmem:[#allocation2 + $0x3] sm:$0xff]  ;;  %2562 = vmatprep.subr.bf16.mxu0 %v2561_v46  ;;  %761 = vmatprep.mubr.f32.mxu0 %v580_v50  ;;  %v588_v55 = vld [vmem:[#allocation2 + $0xb] sm:$0xff]  ;;  %v971_v50 = vld [vmem:[#allocation11 + $0x38] sm:$0xff] }
 0x1af   : > { %v576_v52 = vld [vmem:[#allocation2 + $0x8] sm:$0xff]  ;;  %831 = vmatprep.mubr.f32.mxu1 %v587_v51 }
 0x1b0   : > { %762 = vmatmul.mubr.f32.gmra.mrb[2].mxu0 %v576_v52  ;;  %832 = vmatmul.mubr.f32.vlgmr.msra.gmra.mrb[0].mxu1 %v583_v54  ;;  %v591_v57 = vld [vmem:[#allocation2 + $0x4] sm:$0xff]  ;;  %v592_v9 = vld [vmem:[#allocation2 + $0xc] sm:$0xff] }
 0x1b1   : > { %2564 = vmatpush3.bf16.msra.mxu0 %v2561_v46  ;;  %2378 = vmatprep.mubr.f32.mxu0 %v591_v57  ;;  %v584_v58 = vld [vmem:[#allocation2 + $0xa] sm:$0xff]  ;;  %v987_v46 = vld [vmem:[#allocation11 + $0xb8] sm:$0xff] }
 0x1b2   : > { %836 = vmatprep.mubr.f32.mxu1 %v588_v55  ;;  %2566 = vmatprep.subr.bf16.mxu0 %v2565_v53  ;;  %v969_v38 = vld [vmem:[#allocation11 + $0x28] sm:$0xff]  ;;  %v2601_v49 = vpack.c.bf16 %v987_v46, %v986_v45  ;;  %v1018_v51 = vld [vmem:[#allocation11 + $0x1b0] sm:$0xff]  ;;  %v1019_v52 = vld [vmem:[#allocation11 + $0x1b8] sm:$0xff] }
 0x1b3   : > { %2592 = vmatpush3.bf16.msra.mxu1 %v2591_v17  ;;  %v2599_v43 = vpack.c.bf16 %v969_v38, %v968_v37  ;;  %v1002_v54 = vld [vmem:[#allocation11 + $0x130] sm:$0xff]  ;;  %v1003_v55 = vld [vmem:[#allocation11 + $0x138] sm:$0xff]  ;;  %v989_v57 = vld [vmem:[#allocation11 + $0xc8] sm:$0xff]  ;;  %v2641_v17 = vpack.c.bf16 %v1023_v14, %v1022_v12 }
 0x1b4   : > { %837 = vmatmul.mubr.f32.gmra.mrb[2].mxu1 %v584_v58  ;;  %2594 = vmatprep.subr.bf16.mxu1 %v2593_v26  ;;  %v2603_v58 = vpack.c.bf16 %v971_v50, %v970_v47  ;;  %v2605_v60 = vpack.c.bf16 %v989_v57, %v988_v56  ;;  %v1025_v26 = vld [vmem:[#allocation11 + $0x1e8] sm:$0xff]  ;;  %v1027_v37 = vld [vmem:[#allocation11 + $0x1f8] sm:$0xff] }
 0x1b5   : > { %2568 = vmatpush3.bf16.msra.mxu0 %v2565_v53  ;;  %v2633_v53 = vpack.c.bf16 %v1019_v52, %v1018_v51  ;;  %v2645_v29 = vpack.c.bf16 %v1025_v26, %v1024_v24  ;;  %v1036_v26 = vld [vmem:[#allocation11 + $0x240] sm:$0xff]  ;;  %v1321_v40 = vld [vmem:[#allocation14 + $0x88] sm:$0xff] }
 0x1b6   : > { %2570 = vmatprep.subr.bf16.mxu0 %v2569_v59 }
 0x1b7   : > { %2596 = vmatpush3.bf16.msra.mxu1 %v2595_v27  ;;  %v1008_v27 = vld [vmem:[#allocation11 + $0x160] sm:$0xff] }
 0x1b8   : > { %2598 = vmatprep.subr.bf16.mxu1 %v2597_v36  ;;  %v2647_v30 = vpack.c.bf16 %v1009_v28, %v1008_v27  ;;  %v1026_v36 = vld [vmem:[#allocation11 + $0x1f0] sm:$0xff]  ;;  %v1037_v27 = vld [vmem:[#allocation11 + $0x248] sm:$0xff] }
 0x1b9   : > { %2572 = vmatpush3.bf16.msra.mxu0 %v2569_v59  ;;  %v2635_v59 = vpack.c.bf16 %v1003_v55, %v1002_v54  ;;  %v2649_v39 = vpack.c.bf16 %v1027_v37, %v1026_v36  ;;  %v2669_v28 = vpack.c.bf16 %v1037_v27, %v1036_v26  ;;  %v1043_v36 = vld [vmem:[#allocation11 + $0x278] sm:$0xff] }
 0x1ba   : > { %2574 = vmatprep.subr.bf16.mxu0 %v2573_v62  ;;  %v1314_v26 = vld [vmem:[#allocation14 + $0x50] sm:$0xff]  ;;  %v1315_v27 = vld [vmem:[#allocation14 + $0x58] sm:$0xff] }
 0x1bb   : > { %2600 = vmatpush3.bf16.msra.mxu1 %v2599_v43  ;;  %v1028_v43 = vld [vmem:[#allocation11 + $0x200] sm:$0xff] }
 0x1bc   : > { %2602 = vmatprep.subr.bf16.mxu1 %v2601_v49  ;;  %v2032_v49 = vld [vmem:[#allocation10] ss:$0 sm:$0xff] }
 0x1bd   : > { %2576 = vmatpush3.bf16.msra.mxu0 %v2573_v62  ;;  %v973_v62 = vld [vmem:[#allocation11 + $0x48] sm:$0xff] }
 0x1be   : > { %2578 = vmatprep.subr.bf16.mxu0 %v2577_v2  ;;  %v2607_v0 = vpack.c.bf16 %v973_v62, %v972_v61 }
 0x1bf   : > { %2604 = vmatpush3.bf16.msra.mxu1 %v2603_v58 }
 0x1c0   : > { %2606 = vmatprep.subr.bf16.mxu1 %v2605_v60 }
 0x1c1   : > { %2580 = vmatpush3.bf16.msra.mxu0 %v2577_v2  ;;  %v1021_v2 = vld [vmem:[#allocation11 + $0x1c8] sm:$0xff] }
 0x1c2   : > { %2582 = vmatprep.subr.bf16.mxu0 %v2581_v5 }
 0x1c3   : > { %2608 = vmatpush3.bf16.msra.mxu1 %v2607_v0 }
 0x1c5   : > { %2584 = vmatpush3.bf16.msra.mxu0 %v2581_v5  ;;  %v2637_v5 = vpack.c.bf16 %v1021_v2, %v1020_v63 }
 0x1c6   : > { %2586 = vmatprep.subr.bf16.mxu0 %v2585_v8 }
 0x1c9   : > { %2588 = vmatpush3.bf16.msra.mxu0 %v2585_v8  ;;  %v991_v8 = vld [vmem:[#allocation11 + $0xd8] sm:$0xff] }
 0x1ca   : > { %2622 = vmatprep.subr.bf16.mxu0 %v2621_v18  ;;  %v2643_v18 = vpack.c.bf16 %v1007_v16, %v1006_v15  ;;  %v1032_v15 = vld [vmem:[#allocation11 + $0x220] sm:$0xff]  ;;  %v1033_v16 = vld [vmem:[#allocation11 + $0x228] sm:$0xff] }
 0x1cb   : > { %v2661_v19 = vpack.c.bf16 %v1033_v16, %v1032_v15  ;;  %v1345_v16 = vld [vmem:[#allocation14 + $0x148] sm:$0xff] }
 0x1cc   : > { %2379 = vmatmul.mubr.f32.vlgmr.msra.gmra.mrb[4].mxu0 %v592_v9  ;;  %v2609_v9 = vpack.c.bf16 %v991_v8, %v990_v7  ;;  %v1030_v8 = vld [vmem:[#allocation11 + $0x210] sm:$0xff] }
 0x1cd   : > { %2624 = vmatpush3.bf16.msra.mxu0 %v2623_v22  ;;  %v976_v22 = vld [vmem:[#allocation11 + $0x60] sm:$0xff] }
 0x1ce   : > { %2626 = vmatprep.subr.bf16.mxu0 %v2625_v31  ;;  %2610 = vmatprep.subr.bf16.mxu1 %v2609_v9  ;;  %v2615_v25 = vpack.c.bf16 %v977_v23, %v976_v22  ;;  %v994_v31 = vld [vmem:[#allocation11 + $0xf0] sm:$0xff]  ;;  %v1031_v9 = vld [vmem:[#allocation11 + $0x218] sm:$0xff] }
 0x1cf   : > { %2612 = vmatpush3.bf16.msra.mxu1 %v2611_v13  ;;  %v2617_v34 = vpack.c.bf16 %v995_v32, %v994_v31  ;;  %v2657_v13 = vpack.c.bf16 %v1031_v9, %v1030_v8  ;;  %v1035_v23 = vld [vmem:[#allocation11 + $0x238] sm:$0xff]  ;;  %v1040_v32 = vld [vmem:[#allocation11 + $0x260] sm:$0xff] }
 0x1d0   : > { %2614 = vmatprep.subr.bf16.mxu1 %v2613_v21  ;;  %v1310_v8 = vld [vmem:[#allocation14 + $0x30] sm:$0xff]  ;;  %v1311_v9 = vld [vmem:[#allocation14 + $0x38] sm:$0xff] }
 0x1d1   : > { %2628 = vmatpush3.bf16.msra.mxu0 %v2627_v35  ;;  %v979_v35 = vld [vmem:[#allocation11 + $0x78] sm:$0xff] }
 0x1d2   : > { %2630 = vmatprep.subr.bf16.mxu0 %v2629_v44  ;;  %v2619_v38 = vpack.c.bf16 %v979_v35, %v978_v33  ;;  %v1029_v44 = vld [vmem:[#allocation11 + $0x208] sm:$0xff]  ;;  %v1042_v35 = vld [vmem:[#allocation11 + $0x270] sm:$0xff] }
 0x1d3   : > { %2616 = vmatpush3.bf16.msra.mxu1 %v2615_v25  ;;  %v2653_v45 = vpack.c.bf16 %v1029_v44, %v1028_v43  ;;  %v2665_v25 = vpack.c.bf16 %v1035_v23, %v1034_v20  ;;  %v1041_v33 = vld [vmem:[#allocation11 + $0x268] sm:$0xff]  ;;  %v2681_v37 = vpack.c.bf16 %v1043_v36, %v1042_v35  ;;  %v1346_v23 = vld [vmem:[#allocation14 + $0x150] sm:$0xff] }
 0x1d4   : > { %2618 = vmatprep.subr.bf16.mxu1 %v2617_v34  ;;  %v2677_v34 = vpack.c.bf16 %v1041_v33, %v1040_v32  ;;  %v1337_v43 = vld [vmem:[#allocation14 + $0x108] sm:$0xff]  ;;  %v1304_v44 = vld [vmem:[#allocation14] sm:$0xff] }
 0x1d5   : > { %2632 = vmatpush3.bf16.msra.mxu0 %v2631_v48  ;;  %v1348_v32 = vld [vmem:[#allocation14 + $0x160] sm:$0xff]  ;;  %v1317_v36 = vld [vmem:[#allocation14 + $0x68] sm:$0xff] }
 0x1d6   : > { %2634 = vmatprep.subr.bf16.mxu0 %v2633_v53  ;;  %v1316_v35 = vld [vmem:[#allocation14 + $0x60] sm:$0xff] }
 0x1d7   : > { %2620 = vmatpush3.bf16.msra.mxu1 %v2619_v38 }
 0x1d8   : > { %2654 = vmatprep.subr.bf16.mxu1 %v2653_v45 }
 0x1d9   : > { %2636 = vmatpush3.bf16.msra.mxu0 %v2635_v59 }
 0x1da   : > { %2638 = vmatprep.subr.bf16.mxu0 %v2637_v5 }
 0x1dd   : > { %2640 = vmatpush3.bf16.msra.mxu0 %v2639_v6 }
 0x1de   : > { %2642 = vmatprep.subr.bf16.mxu0 %v2641_v17 }
 0x1e1   : > { %2644 = vmatpush3.bf16.msra.mxu0 %v2643_v18 }
 0x1e2   : > { %2646 = vmatprep.subr.bf16.mxu0 %v2645_v29  ;;  %v1038_v29 = vld [vmem:[#allocation11 + $0x250] sm:$0xff] }
 0x1e5   : > { %2648 = vmatpush3.bf16.msra.mxu0 %v2647_v30  ;;  %v1039_v30 = vld [vmem:[#allocation11 + $0x258] sm:$0xff] }
 0x1e6   : > { %2650 = vmatprep.subr.bf16.mxu0 %v2649_v39  ;;  %v2673_v31 = vpack.c.bf16 %v1039_v30, %v1038_v29  ;;  %v1320_v39 = vld [vmem:[#allocation14 + $0x80] sm:$0xff]  ;;  %v2707_v29 = vpack.c.bf16 %v1315_v27, %v1314_v26 }
 0x1e7   : > { %v1332_v30 = vld [vmem:[#allocation14 + $0xe0] sm:$0xff] }
 0x1e9   : > { %2652 = vmatpush3.bf16.msra.mxu0 %v2651_v42  ;;  %v2685_v42 = vpack.c.bf16 %v1321_v40, %v1320_v39  ;;  %v1334_v39 = vld [vmem:[#allocation14 + $0xf0] sm:$0xff]  ;;  %v1335_v40 = vld [vmem:[#allocation14 + $0xf8] sm:$0xff] }
 0x1eb   : > { %2686 = vmatprep.subr.bf16.mxu0 %v2685_v42  ;;  %v2713_v42 = vpack.c.bf16 %v1335_v40, %v1334_v39  ;;  %v1559_v40 = vld [vmem:[#allocation17 + $0xb0] sm:$0xff] }
 0x27f   : > { %v2075_v46 = vpop.f32.mrb[0].mxu0 }
 0x280   : > { %v2076_v47 = vpop.f32.mrb[1].mxu0 }
 0x281   : > { %v2077_v48 = vadd.f32 %v2076_v47, %v2075_v46  ;;  %v2717_v46 = vpack.c.bf16 %v1337_v43, %v1336_v41  ;;  %v1350_v41 = vld [vmem:[#allocation14 + $0x170] sm:$0xff]  ;;  %v1351_v43 = vld [vmem:[#allocation14 + $0x178] sm:$0xff] }
 0x283   : > { %v2078_v50 = vpop.f32.mrb[2].mxu0  ;;  %v2113_v51 = vpop.f32.mrb[0].mxu1  ;;  %v759_v54 = vadd.f32 %v2077_v48, %v2032_v49  ;;  %v1322_v48 = vld [vmem:[#allocation14 + $0x90] sm:$0xff] }
 0x284   : > { %v2079_v52 = vpop.f32.mrb[3].mxu0  ;;  %v2114_v53 = vpop.f32.mrb[1].mxu1 }
 0x285   : > { %v2080_v55 = vadd.f32 %v2079_v52, %v2078_v50  ;;  %v2115_v56 = vadd.f32 %v2114_v53, %v2113_v51  ;;  %v1338_v50 = vld [vmem:[#allocation14 + $0x110] sm:$0xff]  ;;  %v1339_v52 = vld [vmem:[#allocation14 + $0x118] sm:$0xff] }
 0x286   : > { %v1306_v53 = vld [vmem:[#allocation14 + $0x10] sm:$0xff] }
 0x287   : > { %v2116_v57 = vpop.f32.mrb[2].mxu1  ;;  %v834_v58 = vadd.f32 %v2115_v56, %v759_v54  ;;  %v764_v60 = vadd.f32 %v2080_v55, %v2032_v49  ;;  %v1323_v49 = vld [vmem:[#allocation14 + $0x98] sm:$0xff]  ;;  %v2721_v55 = vpack.c.bf16 %v1339_v52, %v1338_v50  ;;  %v1570_v52 = vld [vmem:[#allocation17 + $0x108] sm:$0xff] }
 0x288   : > { %v2117_v59 = vpop.f32.mrb[3].mxu1  ;;  %v2689_v51 = vpack.c.bf16 %v1323_v49, %v1322_v48  ;;  %v1307_v54 = vld [vmem:[#allocation14 + $0x18] sm:$0xff]  ;;  %v1553_v48 = vld [vmem:[#allocation17 + $0x80] sm:$0xff]  ;;  %v1554_v49 = vld [vmem:[#allocation17 + $0x88] sm:$0xff] }
 0x289   : > { %v2118_v61 = vadd.f32 %v2117_v59, %v2116_v57  ;;  %v2691_v56 = vpack.c.bf16 %v1307_v54, %v1306_v53  ;;  %v1324_v57 = vld [vmem:[#allocation14 + $0xa0] sm:$0xff]  ;;  %v2749_v50 = vpack.c.bf16 %v1554_v49, %v1553_v48 }
 0x28a   : > { %v1340_v59 = vld [vmem:[#allocation14 + $0x120] sm:$0xff] }
 0x28b   : > { %v839_v62 = vadd.f32 %v2118_v61, %v764_v60  ;;  %v1341_v61 = vld [vmem:[#allocation14 + $0x128] sm:$0xff] }
 0x28c   : > { %v1561_v49 = vld [vmem:[#allocation17 + $0xc0] sm:$0xff] }
 0x29f   : > { %v2380_v63 = vpop.f32.mrb[4].mxu0 }
 0x2a0   : > { %v914_v0 = vadd.f32 %v2380_v63, %v839_v62  ;;  %v908_v2 = vpop.f32.mrb[5].mxu0  ;;  %v1308_v62 = vld [vmem:[#allocation14 + $0x20] sm:$0xff]  ;;  %v1309_v63 = vld [vmem:[#allocation14 + $0x28] sm:$0xff] }
 0x2a1   : > { %v909_v3 = vadd.f32 %v908_v2, %v834_v58  ;;  %v1325_v58 = vld [vmem:[#allocation14 + $0xa8] sm:$0xff]  ;;  %v1326_v2 = vld [vmem:[#allocation14 + $0xb0] sm:$0xff] }
 0x2a2   : > { %vm918_vm6 = vcmp.ge.f32.partialorder %v914_v0, 0.0  ;;  %v920_v4 = vmul.f32 0.01, %v914_v0  ;;  %v2693_v60 = vpack.c.bf16 %v1325_v58, %v1324_v57 }
 0x2a3   : > { %vm917_vm9 = vcmp.ge.f32.partialorder %v909_v3, 0.0  ;;  %v919_v5 = vmul.f32 0.01, %v909_v3 }
 0x2a4   : > { %v922_v6 = vsel %vm918_vm6, %v914_v0, %v920_v4  ;;  %v2725_v0 = vpack.c.bf16 %v1341_v61, %v1340_v59  ;;  %v1342_v4 = vld [vmem:[#allocation14 + $0x130] sm:$0xff] }
 0x2a5   : > { %925 = vst.msk [vmem:[#allocation2 + $0xa] sm:$0xff] %vm923_vm5, %v922_v6  ;;  %v921_v7 = vsel %vm917_vm9, %v909_v3, %v919_v5  ;;  %v1327_v3 = vld [vmem:[#allocation14 + $0xb8] sm:$0xff] }
 0x2a6   : > { %929 = vst.msk [vmem:[#allocation2 + $0xc] sm:$0x40] %vm928_vm7, %v922_v6  ;;  %v1343_v5 = vld [vmem:[#allocation14 + $0x138] sm:$0xff] }
 0x2a7   : > { %933 = vst.msk [vmem:[#allocation2 + $0xe] sm:$0x20] %vm932_vm8, %v922_v6  ;;  %v2695_v6 = vpack.c.bf16 %v1309_v63, %v1308_v62 }
 0x2a8   : > { %927 = vst.msk [vmem:[#allocation2] sm:$0x2] %vm926_vm10, %v921_v7 }
 0x2a9   : > { %931 = vst.msk [vmem:[#allocation2 - $0x2] sm:$0x4] %vm930_vm11, %v921_v7 }
 0x2aa   : > { %924 = vst.msk [vmem:[#allocation2 + $0x2] sm:$0xff] %vm923_vm5, %v921_v7  ;;  %v2697_v7 = vpack.c.bf16 %v1327_v3, %v1326_v2 }
 0x2ac   : > { %v943_v22 = vld [vmem:[#allocation2 + $0xa] sm:$0xff] }
 0x2ad   : > { %v947_v18 = vld [vmem:[#allocation2 + $0xb] sm:$0xff] }
 0x2ae   : > { %v951_v38 = vld [vmem:[#allocation2 + $0xc] sm:$0xff] }
 0x2b1   : > { %v938_v10 = vld [vmem:[#allocation2 + $0x1] sm:$0xff]  ;;  %v939_v17 = vld [vmem:[#allocation2 + $0x9] sm:$0xff] }
 0x2b2   : > { %v946_v11 = vld [vmem:[#allocation2 + $0x3] sm:$0xff]  ;;  %1115 = vmatprep.mubr.f32.mxu1 %v938_v10  ;;  %v2729_v10 = vpack.c.bf16 %v1343_v5, %v1342_v4 }
 0x2b3   : > { %v934_v12 = vld [vmem:[#allocation2] sm:$0xff]  ;;  %1190 = vmatprep.mubr.f32.mxu0 %v946_v11  ;;  %v935_v21 = vld [vmem:[#allocation2 + $0x8] sm:$0xff]  ;;  %v2699_v11 = vpack.c.bf16 %v1311_v9, %v1310_v8 }
 0x2b4   : > { %v942_v14 = vld [vmem:[#allocation2 + $0x2] sm:$0xff]  ;;  %1116 = vmatmul.mubr.f32.vlgmr.msra.gmra.mrb[4].mxu1 %v934_v12 }
 0x2b5   : > { %1191 = vmatmul.mubr.f32.vlgmr.msra.gmra.mrb[6].mxu0 %v942_v14  ;;  %2656 = vmatpush3.bf16.msra.mxu1 %v2653_v45  ;;  %v950_v24 = vld [vmem:[#allocation2 + $0x4] sm:$0xff] }
 0x2b6   : > { %1120 = vmatprep.mubr.f32.mxu1 %v939_v17  ;;  %1195 = vmatprep.mubr.f32.mxu0 %v947_v18  ;;  %v1305_v45 = vld [vmem:[#allocation14 + $0x8] sm:$0xff]  ;;  %v1328_v12 = vld [vmem:[#allocation14 + $0xc0] sm:$0xff] }
 0x2b7   : > { %2658 = vmatprep.subr.bf16.mxu1 %v2657_v13  ;;  %v2687_v47 = vpack.c.bf16 %v1305_v45, %v1304_v44  ;;  %v1344_v14 = vld [vmem:[#allocation14 + $0x140] sm:$0xff]  ;;  %v1313_v18 = vld [vmem:[#allocation14 + $0x48] sm:$0xff]  ;;  %v1318_v44 = vld [vmem:[#allocation14 + $0x70] sm:$0xff] }
 0x2b8   : > { %1121 = vmatmul.mubr.f32.gmra.mrb[6].mxu1 %v935_v21  ;;  %v1312_v17 = vld [vmem:[#allocation14 + $0x40] sm:$0xff]  ;;  %v1330_v21 = vld [vmem:[#allocation14 + $0xd0] sm:$0xff]  ;;  %v1319_v45 = vld [vmem:[#allocation14 + $0x78] sm:$0xff] }
 0x2b9   : > { %1196 = vmatmul.mubr.f32.gmra.mrb[8].mxu0 %v943_v22  ;;  %2660 = vmatpush3.bf16.msra.mxu1 %v2657_v13  ;;  %v1329_v13 = vld [vmem:[#allocation14 + $0xc8] sm:$0xff]  ;;  %v2703_v20 = vpack.c.bf16 %v1313_v18, %v1312_v17  ;;  %v1331_v22 = vld [vmem:[#allocation14 + $0xd8] sm:$0xff] }
 0x2ba   : > { %2413 = vmatprep.mubr.f32.mxu1 %v950_v24  ;;  %2662 = vmatprep.subr.bf16.mxu1 %v2661_v19  ;;  %v2701_v15 = vpack.c.bf16 %v1329_v13, %v1328_v12  ;;  %v2705_v24 = vpack.c.bf16 %v1331_v22, %v1330_v21  ;;  %v1538_v17 = vld [vmem:[#allocation17 + $0x8] sm:$0xff]  ;;  %v1555_v18 = vld [vmem:[#allocation17 + $0x90] sm:$0xff]  ;;  %v1572_v21 = vld [vmem:[#allocation17 + $0x118] sm:$0xff] }
 0x2bb   : > { %2688 = vmatpush3.bf16.msra.mxu0 %v2687_v47  ;;  %v2715_v47 = vpack.c.bf16 %v1319_v45, %v1318_v44  ;;  %v1574_v44 = vld [vmem:[#allocation17 + $0x128] sm:$0xff]  ;;  %v1543_v45 = vld [vmem:[#allocation17 + $0x30] sm:$0xff] }
 0x2bc   : > { %2690 = vmatprep.subr.bf16.mxu0 %v2689_v51  ;;  %v1569_v51 = vld [vmem:[#allocation17 + $0x100] sm:$0xff] }
 0x2bd   : > { %2664 = vmatpush3.bf16.msra.mxu1 %v2661_v19  ;;  %v2733_v19 = vpack.c.bf16 %v1345_v16, %v1344_v14  ;;  %v2781_v53 = vpack.c.bf16 %v1570_v52, %v1569_v51  ;;  %v1537_v16 = vld [vmem:[#allocation17] sm:$0xff]  ;;  %v1575_v52 = vld [vmem:[#allocation17 + $0x130] sm:$0xff] }
 0x2be   : > { %2666 = vmatprep.subr.bf16.mxu1 %v2665_v25  ;;  %v2751_v22 = vpack.c.bf16 %v1538_v17, %v1537_v16  ;;  %v1582_v17 = vld [vmem:[#allocation17 + $0x168] sm:$0xff] }
 0x2bf   : > { %2692 = vmatpush3.bf16.msra.mxu0 %v2691_v56  ;;  %v2033_v56 = vld [vmem:[#allocation13] ss:$0 sm:$0xff] }
 0x2c0   : > { %2694 = vmatprep.subr.bf16.mxu0 %v2693_v60 }
 0x2c1   : > { %2668 = vmatpush3.bf16.msra.mxu1 %v2665_v25  ;;  %v1347_v25 = vld [vmem:[#allocation14 + $0x158] sm:$0xff] }
 0x2c2   : > { %2670 = vmatprep.subr.bf16.mxu1 %v2669_v28 }
 0x2c3   : > { %2696 = vmatpush3.bf16.msra.mxu0 %v2695_v6 }
 0x2c4   : > { %2698 = vmatprep.subr.bf16.mxu0 %v2697_v7 }
 0x2c5   : > { %2672 = vmatpush3.bf16.msra.mxu1 %v2669_v28  ;;  %v2737_v28 = vpack.c.bf16 %v1347_v25, %v1346_v23  ;;  %v1539_v23 = vld [vmem:[#allocation17 + $0x10] sm:$0xff] }
 0x2c6   : > { %2674 = vmatprep.subr.bf16.mxu1 %v2673_v31 }
 0x2c7   : > { %2700 = vmatpush3.bf16.msra.mxu0 %v2699_v11 }
 0x2c8   : > { %2702 = vmatprep.subr.bf16.mxu0 %v2701_v15 }
 0x2c9   : > { %2676 = vmatpush3.bf16.msra.mxu1 %v2673_v31  ;;  %v1333_v31 = vld [vmem:[#allocation14 + $0xe8] sm:$0xff] }
 0x2ca   : > { %2678 = vmatprep.subr.bf16.mxu1 %v2677_v34  ;;  %v2709_v33 = vpack.c.bf16 %v1333_v31, %v1332_v30  ;;  %v1557_v30 = vld [vmem:[#allocation17 + $0xa0] sm:$0xff]  ;;  %v1558_v31 = vld [vmem:[#allocation17 + $0xa8] sm:$0xff] }
 0x2cb   : > { %2704 = vmatpush3.bf16.msra.mxu0 %v2703_v20  ;;  %v1571_v20 = vld [vmem:[#allocation17 + $0x110] sm:$0xff] }
 0x2cc   : > { %2706 = vmatprep.subr.bf16.mxu0 %v2705_v24  ;;  %v1540_v24 = vld [vmem:[#allocation17 + $0x18] sm:$0xff] }
 0x2cd   : > { %2680 = vmatpush3.bf16.msra.mxu1 %v2677_v34  ;;  %v1349_v34 = vld [vmem:[#allocation14 + $0x168] sm:$0xff] }
 0x2ce   : > { %2682 = vmatprep.subr.bf16.mxu1 %v2681_v37 }
 0x2cf   : > { %2708 = vmatpush3.bf16.msra.mxu0 %v2707_v29 }
 0x2d0   : > { %2710 = vmatprep.subr.bf16.mxu0 %v2709_v33 }
 0x2d1   : > { %2684 = vmatpush3.bf16.msra.mxu1 %v2681_v37  ;;  %v2741_v37 = vpack.c.bf16 %v1349_v34, %v1348_v32  ;;  %v2785_v32 = vpack.c.bf16 %v1572_v21, %v1571_v20  ;;  %v2755_v34 = vpack.c.bf16 %v1540_v24, %v1539_v23  ;;  %v1584_v23 = vld [vmem:[#allocation17 + $0x178] sm:$0xff] }
 0x2d2   : > { %2718 = vmatprep.subr.bf16.mxu1 %v2717_v46 }
 0x2d4   : > { %2414 = vmatmul.mubr.f32.vlgmr.msra.gmra.mrb[8].mxu1 %v951_v38  ;;  %v2711_v38 = vpack.c.bf16 %v1317_v36, %v1316_v35  ;;  %v2757_v35 = vpack.c.bf16 %v1558_v31, %v1557_v30  ;;  %v1541_v36 = vld [vmem:[#allocation17 + $0x20] sm:$0xff] }
 0x2d5   : > { %2720 = vmatpush3.bf16.msra.mxu1 %v2717_v46  ;;  %v2745_v46 = vpack.c.bf16 %v1351_v43, %v1350_v41  ;;  %v1560_v41 = vld [vmem:[#allocation17 + $0xb8] sm:$0xff] }
 0x2d6   : > { %2722 = vmatprep.subr.bf16.mxu1 %v2721_v55  ;;  %2712 = vmatpush3.bf16.msra.mxu0 %v2711_v38  ;;  %v2761_v43 = vpack.c.bf16 %v1560_v41, %v1559_v40 }
 0x2d7   : > { %2714 = vmatprep.subr.bf16.mxu0 %v2713_v42  ;;  %v1573_v42 = vld [vmem:[#allocation17 + $0x120] sm:$0xff] }
 0x2d9   : > { %2724 = vmatpush3.bf16.msra.mxu1 %v2721_v55 }
 0x2da   : > { %2726 = vmatprep.subr.bf16.mxu1 %v2725_v0  ;;  %2716 = vmatpush3.bf16.msra.mxu0 %v2715_v47  ;;  %v2789_v47 = vpack.c.bf16 %v1574_v44, %v1573_v42 }
 0x2db   : > { %2750 = vmatprep.subr.bf16.mxu0 %v2749_v50  ;;  %v1562_v50 = vld [vmem:[#allocation17 + $0xc8] sm:$0xff] }
 0x2dc   : > { %v2765_v51 = vpack.c.bf16 %v1562_v50, %v1561_v49  ;;  %v1749_v49 = vld [vmem:[#allocation4] sm:$0x1]  ;;  %v3347_v50 = vmov 0  }
 0x2dd   : > { %2728 = vmatpush3.bf16.msra.mxu1 %v2725_v0  ;;  %2960 = vset.pattern.permute.xlu1 %v3347_v50 }
 0x2de   : > { %2730 = vmatprep.subr.bf16.mxu1 %v2729_v10  ;;  %2961 = vset.pattern.permute.xlu0 %v3347_v50 }
 0x2df   : > { %1752 = vperm.xlu1 %2960, %v1749_v49  }
 0x2e1   : > { %2732 = vmatpush3.bf16.msra.mxu1 %v2729_v10 }
 0x2e2   : > { %2734 = vmatprep.subr.bf16.mxu1 %v2733_v19 }
 0x2e5   : > { %2736 = vmatpush3.bf16.msra.mxu1 %v2733_v19  ;;  %v1556_v19 = vld [vmem:[#allocation17 + $0x98] sm:$0xff] }
 0x2e6   : > { %2738 = vmatprep.subr.bf16.mxu1 %v2737_v28 }
 0x2e9   : > { %2740 = vmatpush3.bf16.msra.mxu1 %v2737_v28  ;;  %v2753_v28 = vpack.c.bf16 %v1556_v19, %v1555_v18  ;;  %v1551_v18 = vld [vmem:[#allocation17 + $0x70] sm:$0xff]  ;;  %v1552_v19 = vld [vmem:[#allocation17 + $0x78] sm:$0xff] }
 0x2ea   : > { %2742 = vmatprep.subr.bf16.mxu1 %v2741_v37  ;;  %v2779_v21 = vpack.c.bf16 %v1552_v19, %v1551_v18 }
 0x2ed   : > { %2744 = vmatpush3.bf16.msra.mxu1 %v2741_v37  ;;  %v1542_v37 = vld [vmem:[#allocation17 + $0x28] sm:$0xff] }
 0x2ee   : > { %2746 = vmatprep.subr.bf16.mxu1 %v2745_v46  ;;  %v2759_v39 = vpack.c.bf16 %v1542_v37, %v1541_v36 }
 0x2f1   : > { %2748 = vmatpush3.bf16.msra.mxu1 %v2745_v46  ;;  %v1544_v46 = vld [vmem:[#allocation17 + $0x38] sm:$0xff] }
 0x2f2   : > { %2782 = vmatprep.subr.bf16.mxu1 %v2781_v53  ;;  %v2763_v48 = vpack.c.bf16 %v1544_v46, %v1543_v45 }
 0x387   : > { %v2169_v54 = vpop.f32.mrb[4].mxu1 }
 0x388   : > { %v2207_v55 = vpop.f32.mrb[6].mxu0  ;;  %v2170_v57 = vpop.f32.mrb[5].mxu1 }
 0x389   : > { %v2208_v58 = vpop.f32.mrb[7].mxu0  ;;  %v2171_v59 = vadd.f32 %v2170_v57, %v2169_v54  ;;  %v1545_v54 = vld [vmem:[#allocation17 + $0x40] sm:$0xff] }
 0x38a   : > { %v2209_v60 = vadd.f32 %v2208_v58, %v2207_v55  ;;  %v1563_v58 = vld [vmem:[#allocation17 + $0xd0] sm:$0xff] }
 0x38b   : > { %v1118_v61 = vadd.f32 %v2171_v59, %v2033_v56  ;;  %v2172_v62 = vpop.f32.mrb[6].mxu1  ;;  %v1564_v59 = vld [vmem:[#allocation17 + $0xd8] sm:$0xff] }
 0x38c   : > { %v2210_v63 = vpop.f32.mrb[8].mxu0  ;;  %v2173_v0 = vpop.f32.mrb[7].mxu1 }
 0x38d   : > { %v2211_v2 = vpop.f32.mrb[9].mxu0  ;;  %v2174_v3 = vadd.f32 %v2173_v0, %v2172_v62  ;;  %v1193_v5 = vadd.f32 %v2209_v60, %v1118_v61  ;;  %v1577_v60 = vld [vmem:[#allocation17 + $0x140] sm:$0xff]  ;;  %v2769_v61 = vpack.c.bf16 %v1564_v59, %v1563_v58  ;;  %v1578_v62 = vld [vmem:[#allocation17 + $0x148] sm:$0xff]  ;;  %v1548_v0 = vld [vmem:[#allocation17 + $0x58] sm:$0xff] }
 0x38e   : > { %v2212_v4 = vadd.f32 %v2211_v2, %v2210_v63  ;;  %v1547_v63 = vld [vmem:[#allocation17 + $0x50] sm:$0xff]  ;;  %v2797_v2 = vpack.c.bf16 %v1578_v62, %v1577_v60 }
 0x38f   : > { %v1123_v6 = vadd.f32 %v2174_v3, %v2033_v56  ;;  %v1546_v56 = vld [vmem:[#allocation17 + $0x48] sm:$0xff]  ;;  %v2771_v3 = vpack.c.bf16 %v1548_v0, %v1547_v63 }
 0x390   : > { %v2767_v57 = vpack.c.bf16 %v1546_v56, %v1545_v54 }
 0x391   : > { %v1198_v7 = vadd.f32 %v2212_v4, %v1123_v6  ;;  %v1565_v4 = vld [vmem:[#allocation17 + $0xe0] sm:$0xff]  ;;  %v1579_v6 = vld [vmem:[#allocation17 + $0x150] sm:$0xff] }
 0x3a7   : > { %v2415_v8 = vpop.f32.mrb[8].mxu1 }
 0x3a8   : > { %v1273_v9 = vadd.f32 %v2415_v8, %v1198_v7  ;;  %v1267_v10 = vpop.f32.mrb[9].mxu1  ;;  %v1580_v8 = vld [vmem:[#allocation17 + $0x158] sm:$0xff] }
 0x3a9   : > { %v1268_v11 = vadd.f32 %v1267_v10, %v1193_v5  ;;  %v1566_v5 = vld [vmem:[#allocation17 + $0xe8] sm:$0xff] }
 0x3aa   : > { %vm1277_vm12 = vcmp.ge.f32.partialorder %v1273_v9, 0.0  ;;  %v1279_v12 = vmul.f32 0.01, %v1273_v9  ;;  %v2773_v7 = vpack.c.bf16 %v1566_v5, %v1565_v4  ;;  %v1550_v10 = vld [vmem:[#allocation17 + $0x68] sm:$0xff]  ;;  %v1748_v5 = vld [vmem:[#allocation20] sm:$0x1] }
 0x3ab   : > { %vm1276_vm13 = vcmp.ge.f32.partialorder %v1268_v11, 0.0  ;;  %v1278_v13 = vmul.f32 0.01, %v1268_v11 }
 0x3ac   : > { %v1281_v14 = vsel %vm1277_vm12, %v1273_v9, %v1279_v12  ;;  %v1549_v9 = vld [vmem:[#allocation17 + $0x60] sm:$0xff] }
 0x3ad   : > { %1285 = vst.msk [vmem:[#allocation2 + $0xb] sm:$0x40] %vm928_vm7, %v1281_v14  ;;  %v1280_v15 = vsel %vm1276_vm13, %v1268_v11, %v1278_v13  ;;  %v2801_v11 = vpack.c.bf16 %v1580_v8, %v1579_v6  ;;  %v2775_v12 = vpack.c.bf16 %v1550_v10, %v1549_v9  ;;  %v1567_v13 = vld [vmem:[#allocation17 + $0xf0] sm:$0xff]  ;;  %v1755_v6 = vlaneseq  ;;  %v1753_v9 = vpop.permute.xlu1 %1752 }
 0x3ae   : > { %1283 = vst.msk [vmem:[#allocation2 + $0x9] sm:$0xff] %vm923_vm5, %v1281_v14  ;;  %1282 = vst.msk [vmem:[#allocation2 + $0x1] sm:$0xff] %vm923_vm5, %v1280_v15  ;;  %v1568_v14 = vld [vmem:[#allocation17 + $0xf8] sm:$0xff]  ;;  %vm1839_vm5 = vcmask 122880  }
 0x3af   : > { %1284 = vst.msk [vmem:[#allocation2 - $0x1] sm:$0x2] %vm926_vm10, %v1280_v15  ;;  %v1581_v15 = vld [vmem:[#allocation17 + $0x160] sm:$0xff]  ;;  %v2777_v16 = vpack.c.bf16 %v1568_v14, %v1567_v13 }
 0x3b0   : > { %v2805_v20 = vpack.c.bf16 %v1582_v17, %v1581_v15 }
 0x3b5   : > { %v1290_v25 = vld [vmem:[#allocation2 + $0x1] sm:$0xff]  ;;  %v1295_v29 = vld [vmem:[#allocation2 + $0xa] sm:$0xff] }
 0x3b6   : > { %v1294_v26 = vld [vmem:[#allocation2 + $0x2] sm:$0xff]  ;;  %1423 = vmatprep.mubr.f32.mxu0 %v1290_v25 }
 0x3b7   : > { %v1286_v27 = vld [vmem:[#allocation2] sm:$0xff]  ;;  %2448 = vmatprep.mubr.f32.mxu1 %v1294_v26  ;;  %v1291_v33 = vld [vmem:[#allocation2 + $0x9] sm:$0xff] }
 0x3b8   : > { %1424 = vmatmul.mubr.f32.vlgmr.msra.gmra.mrb[10].mxu0 %v1286_v27  ;;  %2449 = vmatmul.mubr.f32.vlgmr.msra.gmra.mrb[10].mxu1 %v1295_v29  ;;  %v1287_v38 = vld [vmem:[#allocation2 + $0x8] sm:$0xff] }
 0x3b9   : > { %1428 = vmatprep.mubr.f32.mxu0 %v1291_v33  ;;  %2752 = vmatpush3.bf16.msra.mxu0 %v2751_v22  ;;  %v1583_v22 = vld [vmem:[#allocation17 + $0x170] sm:$0xff] }
 0x3ba   : > { %2754 = vmatprep.subr.bf16.mxu0 %v2753_v28  ;;  %2784 = vmatpush3.bf16.msra.mxu1 %v2781_v53  ;;  %v1576_v53 = vld [vmem:[#allocation17 + $0x138] sm:$0xff]  ;;  %v2809_v24 = vpack.c.bf16 %v1584_v23, %v1583_v22 }
 0x3bb   : > { %2786 = vmatprep.subr.bf16.mxu1 %v2785_v32  ;;  %v2793_v55 = vpack.c.bf16 %v1576_v53, %v1575_v52  ;;  %v2034_v28 = vld [vmem:[#allocation16] ss:$0 sm:$0xff]  ;;  %v2035_v53 = vld [vmem:[#allocation19] ss:$0 sm:$0xff] }
 0x3bc   : > { %1429 = vmatmul.mubr.f32.gmra.mrb[12].mxu0 %v1287_v38 }
 0x3bd   : > { %2756 = vmatpush3.bf16.msra.mxu0 %v2755_v34 }
 0x3be   : > { %2758 = vmatprep.subr.bf16.mxu0 %v2757_v35  ;;  %2788 = vmatpush3.bf16.msra.mxu1 %v2785_v32 }
 0x3bf   : > { %2790 = vmatprep.subr.bf16.mxu1 %v2789_v47 }
 0x3c1   : > { %2760 = vmatpush3.bf16.msra.mxu0 %v2759_v39 }
 0x3c2   : > { %2762 = vmatprep.subr.bf16.mxu0 %v2761_v43  ;;  %2792 = vmatpush3.bf16.msra.mxu1 %v2789_v47 }
 0x3c3   : > { %2794 = vmatprep.subr.bf16.mxu1 %v2793_v55 }
 0x3c5   : > { %2764 = vmatpush3.bf16.msra.mxu0 %v2763_v48  ;;  %v3345_v48 = vmov 0.0|0.0  }
 0x3c6   : > { %2766 = vmatprep.subr.bf16.mxu0 %v2765_v51  ;;  %2796 = vmatpush3.bf16.msra.mxu1 %v2793_v55 }
 0x3c7   : > { %2798 = vmatprep.subr.bf16.mxu1 %v2797_v2 }
 0x3c9   : > { %2768 = vmatpush3.bf16.msra.mxu0 %v2767_v57 }
 0x3ca   : > { %2770 = vmatprep.subr.bf16.mxu0 %v2769_v61  ;;  %2800 = vmatpush3.bf16.msra.mxu1 %v2797_v2 }
 0x3cb   : > { %2802 = vmatprep.subr.bf16.mxu1 %v2801_v11 }
 0x3cd   : > { %2772 = vmatpush3.bf16.msra.mxu0 %v2771_v3 }
 0x3ce   : > { %2774 = vmatprep.subr.bf16.mxu0 %v2773_v7  ;;  %2804 = vmatpush3.bf16.msra.mxu1 %v2801_v11  ;;  %v1756_v7 = vshrl.u32 %v1755_v6, 7 }
 0x3cf   : > { %2806 = vmatprep.subr.bf16.mxu1 %v2805_v20 }
 0x3d0   : > { %v1757_v8 = vsub.s32 0, %v1756_v7 }
 0x3d1   : > { %2776 = vmatpush3.bf16.msra.mxu0 %v2775_v12 }
 0x3d2   : > { %2778 = vmatprep.subr.bf16.mxu0 %v2777_v16  ;;  %2808 = vmatpush3.bf16.msra.mxu1 %v2805_v20  ;;  %v1758_v10 = vrot.slane %v1753_v9, %v1757_v8 }
 0x3d3   : > { %2810 = vmatprep.subr.bf16.mxu1 %v2809_v24 }
 0x3d5   : > { %2780 = vmatpush3.bf16.msra.mxu0 %v2779_v21 }
 0x3d6   : > { %2812 = vmatpush3.bf16.msra.mxu1 %v2809_v24  ;;  %2813 = vmatprep.subr.bf16.mxu0 %v3345_v48 }
 0x48b   : > { %v2263_v25 = vpop.f32.mrb[10].mxu0  ;;  %v2450_v26 = vpop.f32.mrb[10].mxu1 }
 0x48c   : > { %v2264_v27 = vpop.f32.mrb[11].mxu0  ;;  %v1500_v29 = vpop.f32.mrb[11].mxu1 }
 0x48d   : > { %v2265_v30 = vadd.f32 %v2264_v27, %v2263_v25 }
 0x48f   : > { %v1426_v31 = vadd.f32 %v2265_v30, %v2034_v28  ;;  %v2266_v32 = vpop.f32.mrb[12].mxu0 }
 0x490   : > { %v2267_v33 = vpop.f32.mrb[13].mxu0 }
 0x491   : > { %v1501_v34 = vadd.f32 %v1500_v29, %v1426_v31  ;;  %v2268_v35 = vadd.f32 %v2267_v33, %v2266_v32 }
 0x493   : > { %vm1509_vm14 = vcmp.ge.f32.partialorder %v1501_v34, 0.0  ;;  %v1511_v36 = vmul.f32 0.01, %v1501_v34  ;;  %v1431_v37 = vadd.f32 %v2268_v35, %v2034_v28 }
 0x495   : > { %v1513_v38 = vsel %vm1509_vm14, %v1501_v34, %v1511_v36  ;;  %v1506_v39 = vadd.f32 %v2450_v26, %v1431_v37 }
 0x496   : > { %1517 = vst.msk [vmem:[#allocation2 - $0x1] sm:$0x2] %vm567_vm1, %v1513_v38  ;;  %vm3346_vm1 = vmmov 0  }
 0x497   : > { %1515 = vst.msk [vmem:[#allocation2 + $0x1] sm:$0xff] %vm564_vm0, %v1513_v38  ;;  %vm1510_vm15 = vcmp.ge.f32.partialorder %v1506_v39, 0.0  ;;  %v1512_v40 = vmul.f32 0.01, %v1506_v39 }
 0x499   : > { %v1514_v41 = vsel %vm1510_vm15, %v1506_v39, %v1512_v40 }
 0x49a   : > { %1518 = vst.msk [vmem:[#allocation2 + $0xb] sm:$0x40] %vm569_vm3, %v1514_v41 }
 0x49b   : > { %1516 = vst.msk [vmem:[#allocation2 + $0x9] sm:$0xff] %vm564_vm0, %v1514_v41 }
 0x49e   : > { %v1523_v42 = vld [vmem:[#allocation2 + $0x1] sm:$0xff] }
 0x49f   : > { %v1519_v43 = vld [vmem:[#allocation2] sm:$0xff]  ;;  %1656 = vmatprep.mubr.f32.mxu0 %v1523_v42 }
 0x4a0   : > { %1657 = vmatmul.mubr.f32.vlgmr.msra.gmra.mrb[14].mxu0 %v1519_v43 }
 0x4a2   : > { %v1524_v44 = vld [vmem:[#allocation2 + $0x9] sm:$0xff] }
 0x4a3   : > { %v1527_v45 = vld [vmem:[#allocation2 + $0x2] sm:$0xff]  ;;  %1661 = vmatprep.mubr.f32.mxu0 %v1524_v44  ;;  %v1528_v47 = vld [vmem:[#allocation2 + $0xa] sm:$0xff] }
 0x4a4   : > { %v1520_v46 = vld [vmem:[#allocation2 + $0x8] sm:$0xff]  ;;  %2483 = vmatprep.mubr.f32.mxu1 %v1527_v45 }
 0x4a5   : > { %1662 = vmatmul.mubr.f32.gmra.mrb[16].mxu0 %v1520_v46  ;;  %2484 = vmatmul.mubr.f32.vlgmr.msra.gmra.mrb[12].mxu1 %v1528_v47 }
 0x4a6   : > { %2490 = vmatprep.mubr.msk.f32.mxu0 %vm3346_vm1, %v3344_v1 }
 0x573   : > { %v2319_v51 = vpop.f32.mrb[14].mxu0 }
 0x574   : > { %v2320_v52 = vpop.f32.mrb[15].mxu0 }
 0x575   : > { %v2321_v54 = vadd.f32 %v2320_v52, %v2319_v51 }
 0x577   : > { %v1659_v57 = vadd.f32 %v2321_v54, %v2035_v53 }
 0x578   : > { %v2322_v55 = vpop.f32.mrb[16].mxu0  ;;  %v2485_v56 = vpop.f32.mrb[12].mxu1 }
 0x579   : > { %v2323_v58 = vpop.f32.mrb[17].mxu0  ;;  %v1733_v59 = vpop.f32.mrb[13].mxu1 }
 0x57a   : > { %v2324_v60 = vadd.f32 %v2323_v58, %v2322_v55  ;;  %v1734_v61 = vadd.f32 %v1733_v59, %v1659_v57 }
 0x57c   : > { %v1664_v62 = vadd.f32 %v2324_v60, %v2035_v53  ;;  %v1744_v0 = vmul.f32 0.01, %v1734_v61  ;;  %vm1742_vm0 = vcmp.ge.f32.partialorder %v1734_v61, 0.0 }
 0x57e   : > { %v1739_v63 = vadd.f32 %v2485_v56, %v1664_v62  ;;  %v1746_v2 = vsel %vm1742_vm0, %v1734_v61, %v1744_v0 }
 0x580   : > { %vm1743_vm3 = vcmp.ge.f32.partialorder %v1739_v63, 0.0  ;;  %v1745_v1 = vmul.f32 0.01, %v1739_v63 }
 0x582   : > { %v1747_v3 = vsel %vm1743_vm3, %v1739_v63, %v1745_v1 }
 0x583   : > { %v2814_v4 = vpack.c.bf16 %v1747_v3, %v1746_v2 }
 0x585   : > { %2816 = vmatpush3.bf16.xpose.msk.msra.mxu0 %vm2815_vm4, %v2814_v4 }
 0x58c   : > { %2491 = vmatmul.mubr.msk.f32.vlgmr.msra.gmra.mrb[18].mxu0 %vm1759_vm2, %v1748_v5 }
 0x65f   : > { %v1835_v11 = vpop.f32.mrb[18].mxu0 }
 0x660   : > { %v1836_v12 = vadd.f32 %v1835_v11, %v1758_v10  ;;  %v2492_v13 = vpop.f32.mrb[19].mxu0 }
 0x662   : > { %1840 = vst.msk [vmem:[%s526_s13] sm:$0x1] %vm1839_vm5, %v1836_v12 }
 0x663   : > { %3257 = shalt.err (!%p3254_p3)
}
 0x664   : > { %s3258_s14 = scalar_lea.hbm %s3783_s18, 16  ;;  %s3262_s13 = scalar_lea.hbm %s3870_s27, 32 }
 0x665   : > { %p3259_p5 = scmp.ne.s32.totalorder %s3783_s18, %s3258_s14  ;;  %p3263_p4 = scmp.lt.u32.totalorder %s3783_s18, %s3870_s27 }
 0x666   : > { %p3264_p12 = scmp.lt.u32.totalorder %s3262_s13, %s3258_s14  ;;  %p3266_p13 = scmp.lt.u32.totalorder %s3258_s14, %s3783_s18 }
 0x667   : > { %p3260_p9 = pnand %p3259_p5, %p3871_p0 }
 0x668   : > { %p3265_p1 = por %p3264_p12, %p3263_p4 }
 0x669   : > { %p3261_p7 = pneg %p3260_p9 }
 0x66a   : > { %p3267_p2 = por %p3266_p13, %p3265_p1 }
 0x66c   : > { %p3268_p8 = pnand %p3267_p2, %p3261_p7 }
 0x66e   : > { %3271 = shalt.err (!%p3268_p8)
}
 0x66f   : > { %2855 = dma.vmem_to_hbm [thread:$0]  (%p3871_p0), %s3785_s11, 16, %s3783_s18, %s1842_s29  }
 0x670 PF: > { %s1866_s16 = sand.u32 1, %s3318_s19   ;;  %p3872_p6 = scmp.ne.s32.totalorder %s3855_s15, 0 }
 0x671   : > { %p3873_p10 = scmp.ge.s32.totalorder %s3330_s22, 2  ;;  %s1867_s24 = scalar_lea.sflag [#allocation7], %s1866_s16 }
 0x673   : > { %p2890_p11 = pnand %p3873_p10, %p3872_p6 }
 0x675   : > { %3313 = dma.done.wait (!%p2890_p11), %s1867_s24, 16  }
 0x676   : > { %3315 = vsyncadd (!%p2890_p11), %s1867_s24, 4294967280  ;;  %p31_p3 = scmp.ge.s32.totalorder %s3654_s28, 4   ;;  %s3874_s19 = smov %s3322_s20 }
 0x677   : > { %s3875_s20 = smov %s3326_s21  ;;  %s3876_s21 = smov %s3666_s23 }
 0x678   : > { %s3877_s22 = smov %s3654_s28  ;;  %33 = sbr.rel (!%p31_p3) target bundleno = 13 (0xd), region = 145 }
 0x67f   :  { %1871 = vsyncpa [#allocation6], 1 }
 0x680   :  { %1873 = vsyncpa [#allocation6 + $0x1], 1 }
 0x681   :  { %1874 = vsyncpa [#allocation9], 1 }
 0x682   :  { %1875 = vsyncpa [#allocation12], 1 }
 0x683   :  { %1876 = vsyncpa [#allocation15], 1 }
 0x684   :  { %1877 = vsyncpa [#allocation18], 1 }
 0x685   :  { %1878 = vsyncpa [#allocation21], 1 }
 0x686   :  { %1879 = vsyncpa [#allocation7], 1 }
 0x687   :  { %1881 = vsyncpa [#allocation7 + $0x1], 1 }

</bundles_post_ra>
